<compile_context>
chip_gen: v6e
topology: v6e:2x2x1
jax: 0.10.0
libtpu: 0.0.40
codegen_flags: <defaults>
</compile_context>

<pallas_src>
import functools

import jax
import jax.numpy as jnp
from jax.experimental import pallas as pl
from jax.experimental.pallas import tpu as pltpu


def _clip_vision_kernel(x_ref, w1_ref, b1_ref, w2_ref, b2_ref, o_ref,
                        *, bb, p, output_normalize):
    # x_ref:  (Bb*P, D)   bf16  flattened patches for Bb images (mean/std pre-folded into w1/b1)
    # w1_ref: (D, H)      bf16  folded patch-embed weight
    # b1_ref: (1, H)      f32   folded patch-embed bias
    # w2_ref: (H, Epad)   bf16  projection weight, 1/P mean-pool factor folded in, zero-padded to 128 lanes
    # b2_ref: (1, Epad)   f32   projection bias, zero-padded
    # o_ref:  (Bb, Epad)  f32   lane-dense output slab

    # patch embedding on the MXU, f32 accumulation
    h = jnp.dot(x_ref[...], w1_ref[...], preferred_element_type=jnp.float32)   # (Bb*P, H)
    h = jax.nn.gelu(h + b1_ref[...], approximate=True)

    # mean pool over patches: sublane-split reshape + sum (1/P folded into w2 on the host)
    hd = h.shape[-1]
    pooled = jnp.sum(h.reshape(bb, p, hd), axis=1)                             # (Bb, H)

    # projection head (bf16 operands, f32 accumulation)
    emb = jnp.dot(pooled.astype(jnp.bfloat16), w2_ref[...],
                  preferred_element_type=jnp.float32)
    emb = emb + b2_ref[...]                                                    # (Bb, Epad)

    if output_normalize:
        # F.normalize(dim=-1): x / max(||x||_2, eps), eps = 1e-12 -> x * rsqrt(max(ss, eps^2))
        # Padded columns are exactly zero, so they don't perturb the norm.
        sumsq = jnp.sum(emb * emb, axis=-1, keepdims=True)
        emb = emb * jax.lax.rsqrt(jnp.maximum(sumsq, 1e-24))

    o_ref[...] = emb


def clip_vision_forward(x_nchw, params, *, patch=4, output_normalize=False, batch_tile=32):
    """Forward pass of ClipVisionModel. x_nchw: (B, C, H, W) float32 in [0, 1]."""
    B, C, H, W = x_nchw.shape
    P = (H // patch) * (W // patch)
    D = C * patch * patch

    # ---- glue: NCHW -> (B, P, D) patch matrix ----
    # TODO(synk): at real CLIP resolutions, fuse this patchification into the producer or
    # express it via the input BlockSpec index_map so the kernel reads NCHW directly
    # (the host transpose materializes a full extra copy of the input in HBM).
    xp = x_nchw.reshape(B, C, H // patch, patch, W // patch, patch)
    xp = xp.transpose(0, 2, 4, 1, 3, 5).reshape(B, P, D)

    # per-channel mean/std expanded to the channel-major patch layout
    mean_vec = jnp.repeat(params["mean"], patch * patch).astype(jnp.float32)   # (D,)
    std_vec = jnp.repeat(params["std"], patch * patch).astype(jnp.float32)     # (D,)

    # ---- fold (x - mean) / std into the patch-embed weights (host-side, free) ----
    w1 = params["w1"].astype(jnp.float32)
    b1 = params["b1"].astype(jnp.float32)
    w2 = params["w2"].astype(jnp.float32)
    b2 = params["b2"].astype(jnp.float32)
    w1_fold = w1 / std_vec[:, None]
    b1_fold = b1 - ((mean_vec / std_vec)[None, :] @ w1)
    Hd, E = w1.shape[1], w2.shape[1]

    # ---- pad the embedding dim to a full 128-lane slab and fold 1/P mean-pool into w2 ----
    E_pad = ((E + 127) // 128) * 128
    E_pad = max(E_pad, 128)
    w2_pad = jnp.zeros((Hd, E_pad), jnp.float32).at[:, :E].set(w2 * (1.0 / P))
    b2_pad = jnp.zeros((1, E_pad), jnp.float32).at[:, :E].set(b2)

    # ---- batch tiling: Bb*P rows per step (aim for a multiple of 256 at P=16) ----
    Bb = max(1, min(batch_tile, B))
    B_pad = ((B + Bb - 1) // Bb) * Bb
    if B_pad != B:
        # zero-padded rows produce bias-derived junk embeddings; they are sliced off below.
        xp = jnp.concatenate([xp, jnp.zeros((B_pad - B, P, D), xp.dtype)], axis=0)

    # flatten rows so each grid step sees one sublane-dense (Bb*P, D) matmul operand
    x_rows = xp.reshape(B_pad * P, D).astype(jnp.bfloat16)
    w1_bf = w1_fold.astype(jnp.bfloat16)
    w2_bf = w2_pad.astype(jnp.bfloat16)

    kernel = functools.partial(_clip_vision_kernel, bb=Bb, p=P,
                               output_normalize=output_normalize)

    # ---- explicit VMEM budget (double-buffered streamed tiles + resident weights + headroom),
    #      clamped to v7x's 64 MiB physical VMEM; also covers v5e's 16 MiB scoped default ----
    x_tile_bytes = Bb * P * D * 2
    out_tile_bytes = Bb * E_pad * 4
    resident_bytes = D * Hd * 2 + Hd * 4 + Hd * E_pad * 2 + E_pad * 4
    vmem_limit = int(min(64 << 20,
                         max(16 << 20,
                             3 * (x_tile_bytes + out_tile_bytes) + 2 * resident_bytes)))

    # TODO(synk): if an xprof trace shows exposed DMA on x_rows at real CLIP dims, add
    # pipeline_mode=pl.Buffered(3) to the first in_spec.
    out = pl.pallas_call(
        kernel,
        out_shape=jax.ShapeDtypeStruct((B_pad, E_pad), jnp.float32),
        grid=(B_pad // Bb,),
        in_specs=[
            pl.BlockSpec((Bb * P, D), lambda i: (i, 0)),     # patches for this batch tile (streamed)
            pl.BlockSpec((D, Hd), lambda i: (0, 0)),         # folded patch-embed weight (resident)
            pl.BlockSpec((1, Hd), lambda i: (0, 0)),         # folded patch-embed bias
            pl.BlockSpec((Hd, E_pad), lambda i: (0, 0)),     # head weight (1/P folded, padded)
            pl.BlockSpec((1, E_pad), lambda i: (0, 0)),      # head bias (padded)
        ],
        out_specs=pl.BlockSpec((Bb, E_pad), lambda i: (i, 0)),   # lane/sublane-dense output slab
        compiler_params=pltpu.CompilerParams(
            dimension_semantics=("parallel",),
            vmem_limit_bytes=vmem_limit),
    )(x_rows, w1_bf, b1_fold, w2_bf, b2_pad)

    return out[:B, :E]


def _reference_forward(x_nchw, params, *, patch, output_normalize):
    """Pure-JAX f32 reference matching the module semantics."""
    B, C, H, W = x_nchw.shape
    mean = params["mean"].reshape(1, C, 1, 1)
    std = params["std"].reshape(1, C, 1, 1)
    xn = (x_nchw - mean) / std
    P = (H // patch) * (W // patch)
    D = C * patch * patch
    xp = xn.reshape(B, C, H // patch, patch, W // patch, patch)
    xp = xp.transpose(0, 2, 4, 1, 3, 5).reshape(B, P, D)
    h = jax.nn.gelu(xp @ params["w1"] + params["b1"], approximate=True)
    pooled = h.mean(axis=1)
    emb = pooled @ params["w2"] + params["b2"]
    if output_normalize:
        nrm = jnp.linalg.norm(emb, axis=-1, keepdims=True)
        emb = emb / jnp.maximum(nrm, 1e-12)
    return emb


def init_params(key, *, channels=3, patch=4, hidden=64, embed=32):
    D = channels * patch * patch
    k1, k2, k3, k4 = jax.random.split(key, 4)
    params = {
        # CLIP-style per-channel image normalization constants
        "mean": jnp.array([0.4815, 0.4578, 0.4082], dtype=jnp.float32)[:channels],
        "std": jnp.array([0.2686, 0.2613, 0.2758], dtype=jnp.float32)[:channels],
        "w1": (jax.random.normal(k1, (D, hidden), jnp.float32) * (1.0 / D**0.5)),
        "b1": (jax.random.normal(k2, (1, hidden), jnp.float32) * 0.01),
        "w2": (jax.random.normal(k3, (hidden, embed), jnp.float32) * (1.0 / hidden**0.5)),
        "b2": (jax.random.normal(k4, (1, embed), jnp.float32) * 0.01),
    }
    return params


if __name__ == "__main__":
    key = jax.random.PRNGKey(0)
    kx, kp = jax.random.split(key)

    # 64 images of 3x16x16, patch=4 -> P=16 patches, D=48.
    # batch_tile=32 -> 512 rows per step (multiple of 256 for the v6e/v7x MXU) and an
    # even grid of (2,) so both v7x TensorCores get work.
    B, C, H, W = 64, 3, 16, 16
    x = jax.random.uniform(kx, (B, C, H, W), jnp.float32)      # images in [0, 1]
    params = init_params(kp, channels=C, patch=4, hidden=64, embed=32)

    emb = clip_vision_forward(x, params, patch=4, output_normalize=False, batch_tile=32)
    emb_n = clip_vision_forward(x, params, patch=4, output_normalize=True, batch_tile=32)
    jax.block_until_ready(emb)
    jax.block_until_ready(emb_n)

    assert emb.shape == (B, 32) and emb_n.shape == (B, 32)

    # L2-normalized output should have unit norm along dim=-1
    norms = jnp.linalg.norm(emb_n, axis=-1)
    assert bool(jnp.all(jnp.abs(norms - 1.0) < 1e-3))

    # loose cross-check vs. f32 reference (kernel uses bf16 MXU operands with f32 accumulation)
    ref = _reference_forward(x, params, patch=4, output_normalize=False)
    assert bool(jnp.max(jnp.abs(emb - ref)) < 0.2)

    print("KERNEL_OK")
</pallas_src>

<mosaic_0001>
module attributes {stable_mosaic.version = 11 : i64} {
  func.func @_clip_vision_kernel(%arg0: i32, %arg1: memref<512x48xbf16, #tpu.memory_space<vmem>>, %arg2: memref<48x64xbf16, #tpu.memory_space<vmem>>, %arg3: memref<1x64xf32, #tpu.memory_space<vmem>>, %arg4: memref<64x128xbf16, #tpu.memory_space<vmem>>, %arg5: memref<1x128xf32, #tpu.memory_space<vmem>>, %arg6: memref<32x128xf32, #tpu.memory_space<vmem>>) attributes {dimension_semantics = [#tpu.dimension_semantics<parallel>], iteration_bounds = array<i64: 2>, scalar_prefetch = 0 : i64, scratch_operands = 0 : i64, tpu.core_type = #tpu.core_type<tc>, window_params = [{transform_indices = @transform_0, window_bounds = array<i64: 512, 48>}, {pipeline_mode = #tpu.pipeline_mode<synchronous>, transform_indices = @transform_1, window_bounds = array<i64: 48, 64>}, {pipeline_mode = #tpu.pipeline_mode<synchronous>, transform_indices = @transform_2, window_bounds = array<i64: 1, 64>}, {pipeline_mode = #tpu.pipeline_mode<synchronous>, transform_indices = @transform_3, window_bounds = array<i64: 64, 128>}, {pipeline_mode = #tpu.pipeline_mode<synchronous>, transform_indices = @transform_4, window_bounds = array<i64: 1, 128>}, {transform_indices = @transform_5, window_bounds = array<i64: 32, 128>}]} {
    %c0 = arith.constant 0 : index
    %c0_0 = arith.constant 0 : index
    %0 = vector.load %arg1[%c0, %c0_0] : memref<512x48xbf16, #tpu.memory_space<vmem>>, vector<512x48xbf16>
    %c0_1 = arith.constant 0 : index
    %c0_2 = arith.constant 0 : index
    %1 = vector.load %arg2[%c0_1, %c0_2] : memref<48x64xbf16, #tpu.memory_space<vmem>>, vector<48x64xbf16>
    %cst = arith.constant dense<0.000000e+00> : vector<512x64xf32>
    %2 = tpu.matmul %0, %1, %cst {dimension_numbers = #tpu.dot_dimension_numbers<[1], [0], [0], [1], [0, 0, 1, 1], [], []>} : vector<512x48xbf16>, vector<48x64xbf16>, vector<512x64xf32> -> vector<512x64xf32>
    %c0_3 = arith.constant 0 : index
    %c0_4 = arith.constant 0 : index
    %3 = vector.load %arg3[%c0_3, %c0_4] : memref<1x64xf32, #tpu.memory_space<vmem>>, vector<1x64xf32>
    %4 = vector.broadcast %3 : vector<1x64xf32> to vector<512x64xf32>
    %5 = arith.addf %2, %4 : vector<512x64xf32>
    %6 = arith.mulf %5, %5 : vector<512x64xf32>
    %7 = arith.mulf %5, %6 : vector<512x64xf32>
    %cst_5 = arith.constant 4.471500e-02 : f32
    %8 = vector.broadcast %cst_5 : f32 to vector<512x64xf32>
    %9 = arith.mulf %8, %7 : vector<512x64xf32>
    %10 = arith.addf %5, %9 : vector<512x64xf32>
    %cst_6 = arith.constant 0.797884583 : f32
    %11 = vector.broadcast %cst_6 : f32 to vector<512x64xf32>
    %12 = arith.mulf %11, %10 : vector<512x64xf32>
    %13 = math.tanh %12 : vector<512x64xf32>
    %cst_7 = arith.constant 1.000000e+00 : f32
    %14 = vector.broadcast %cst_7 : f32 to vector<512x64xf32>
    %15 = arith.addf %14, %13 : vector<512x64xf32>
    %cst_8 = arith.constant 5.000000e-01 : f32
    %16 = vector.broadcast %cst_8 : f32 to vector<512x64xf32>
    %17 = arith.mulf %16, %15 : vector<512x64xf32>
    %18 = arith.mulf %5, %17 : vector<512x64xf32>
    %19 = vector.shape_cast %18 : vector<512x64xf32> to vector<32x16x64xf32>
    %cst_9 = arith.constant dense<0.000000e+00> : vector<32x64xf32>
    %20 = vector.multi_reduction <add>, %19, %cst_9 [1] : vector<32x16x64xf32> to vector<32x64xf32>
    %21 = arith.truncf %20 : vector<32x64xf32> to vector<32x64xbf16>
    %c0_10 = arith.constant 0 : index
    %c0_11 = arith.constant 0 : index
    %22 = vector.load %arg4[%c0_10, %c0_11] : memref<64x128xbf16, #tpu.memory_space<vmem>>, vector<64x128xbf16>
    %cst_12 = arith.constant dense<0.000000e+00> : vector<32x128xf32>
    %23 = tpu.matmul %21, %22, %cst_12 {dimension_numbers = #tpu.dot_dimension_numbers<[1], [0], [0], [1], [0, 0, 1, 1], [], []>} : vector<32x64xbf16>, vector<64x128xbf16>, vector<32x128xf32> -> vector<32x128xf32>
    %c0_13 = arith.constant 0 : index
    %c0_14 = arith.constant 0 : index
    %24 = vector.load %arg5[%c0_13, %c0_14] : memref<1x128xf32, #tpu.memory_space<vmem>>, vector<1x128xf32>
    %25 = vector.broadcast %24 : vector<1x128xf32> to vector<32x128xf32>
    %26 = arith.addf %23, %25 : vector<32x128xf32>
    %c0_15 = arith.constant 0 : index
    %c0_16 = arith.constant 0 : index
    %27 = vector.load %arg6[%c0_15, %c0_16] : memref<32x128xf32, #tpu.memory_space<vmem>>, vector<32x128xf32>
    tpu.vector_store %arg6[%c0_15, %c0_16], %26 {strides = array<i32>} : memref<32x128xf32, #tpu.memory_space<vmem>>, vector<32x128xf32>,
    return
  }
  func.func @transform_0(%arg0: i32) -> (i32, i32) {
    %c0_i32 = arith.constant 0 : i32
    %c0_i32_0 = arith.constant 0 : i32
    return %arg0, %c0_i32 : i32, i32
  }
  func.func @transform_1(%arg0: i32) -> (i32, i32) {
    %c0_i32 = arith.constant 0 : i32
    %c0_i32_0 = arith.constant 0 : i32
    %c0_i32_1 = arith.constant 0 : i32
    return %c0_i32, %c0_i32_0 : i32, i32
  }
  func.func @transform_2(%arg0: i32) -> (i32, i32) {
    %c0_i32 = arith.constant 0 : i32
    %c0_i32_0 = arith.constant 0 : i32
    %c0_i32_1 = arith.constant 0 : i32
    return %c0_i32, %c0_i32_0 : i32, i32
  }
  func.func @transform_3(%arg0: i32) -> (i32, i32) {
    %c0_i32 = arith.constant 0 : i32
    %c0_i32_0 = arith.constant 0 : i32
    %c0_i32_1 = arith.constant 0 : i32
    return %c0_i32, %c0_i32_0 : i32, i32
  }
  func.func @transform_4(%arg0: i32) -> (i32, i32) {
    %c0_i32 = arith.constant 0 : i32
    %c0_i32_0 = arith.constant 0 : i32
    %c0_i32_1 = arith.constant 0 : i32
    return %c0_i32, %c0_i32_0 : i32, i32
  }
  func.func @transform_5(%arg0: i32) -> (i32, i32) {
    %c0_i32 = arith.constant 0 : i32
    %c0_i32_0 = arith.constant 0 : i32
    return %arg0, %c0_i32 : i32, i32
  }
}

</mosaic_0001>

<bundles_post_ra>
// kernel: tpu_custom_call.1
= control target key start
LH: loop header
LB: loop body
LE: loop exit
PB: predicated region body
PF: predicated region fallthrough
CT: control target
= control target key end

     0   :  { %10 = vsyncpa [#allocation3], 0  ;;  %s3611_s0 = inlined_call_operand.vmem [shape: bf16[1024,48], index: 0, kind: input, shape index: {}]   ;;  %s3612_s1 = inlined_call_operand.vmem [shape: bf16[48,64], index: 1, kind: input, shape index: {}]   ;;  %s3613_s2 = inlined_call_operand.vmem [shape: f32[1,64], index: 2, kind: input, shape index: {}]   ;;  %s3614_s3 = inlined_call_operand.vmem [shape: bf16[64,128], index: 3, kind: input, shape index: {}]   ;;  %s3615_s4 = inlined_call_operand.vmem [shape: f32[1,128], index: 4, kind: input, shape index: {}]   ;;  %s3616_s5 = inlined_call_operand.hbm [shape: f32[64,128], index: 5, kind: output, shape index: {}]  }
   0x1   :  { %12 = vsyncpa [#allocation3 + $0x1], 0  ;;  %s2561_s18 = smov 0   ;;  %s2563_s19 = smov 0  }
   0x2   :  { %s2565_s20 = smov 0   ;;  %s2567_s21 = smov 0  }
   0x3 LB: > { %s2582_s22 = sadd.s32 4294967295, %s2526_s21   ;;  %s2040_s23 = sadd.s32 4294967294, %s2526_s21   ;;  %s2526_s21 = sphi %s2567_s21, %s3630_s21   ;;  %s2522_s20 = sphi %s2565_s20, %s3629_s20   ;;  %s2518_s19 = sphi %s2563_s19, %s3628_s19   ;;  %s2514_s18 = sphi %s2561_s18, %s3627_s18  }
   0x4   : > { %s2586_s24 = sadd.s32 1, %s2526_s21   ;;  %s135_s25 = sadd.s32 1, %s2522_s20 }
   0x5   : > { %s132_s26 = ssub.s32 %s2526_s21, %s2586_s24  ;;  %p145_p0 = scmp.ne.s32.totalorder %s2522_s20, %s2518_s19 }
   0x6   : > { %p133_p1 = scmp.eq.s32.totalorder %s132_s26, 0  ;;  %p146_p2 = scmp.eq.s32.totalorder %s2582_s22, 1 }
   0x7   : > { %p151_p3 = scmp.ne.s32.totalorder %s2518_s19, %s2514_s18  ;;  %p152_p4 = scmp.eq.s32.totalorder %s2040_s23, 1 }
   0x8   : > { %s2597_s27 = scalar_select %p133_p1, %s2522_s20, %s135_s25  }
   0x9   : > { %p2599_p5 = por %p146_p2, %p145_p0  ;;  %p2603_p6 = por %p152_p4, %p151_p3 }
   0xa   : > { %p2043_p7 = scmp.ge.s32.totalorder %s2526_s21, 1  ;;  %p191_p8 = scmp.lt.s32.totalorder %s2526_s21, 3 }
   0xc   : > { %p192_p9 = pnand %p2043_p7, %p191_p8 }
   0xd   : > { %s2045_s7 = sshll.u32 (!%p192_p9), %s2582_s22, 6  ;;  %s2127_s23 = sshll.u32 (!%p192_p9), %s2582_s22, 9 }
   0xe   : > { %195 = sbr.rel (%p192_p9) target bundleno = 704 (0x2c0), region = 40  ;;  %p220_p10 = scmp.lt.s32.totalorder (!%p192_p9), %s2045_s7, 127 }
   0xf   : > { %s3569_s30 = scalar_lea.hbm (!%p192_p9), %s3616_s5, %s2127_s23  ;;  %s2528_s22 = smov (!%p192_p9), [#allocation2]  }
  0x10   : > { %s2470_s8 = sshll.u32 (!%p192_p9), %s2528_s22, 4  ;;  %s2471_s8 = int_to_ptr.vmem [resolvable:$false] %s2470_s8 }
  0x11   : > { %s2472_s9 = scalar_lea.vmem (!%p192_p9), %s2471_s8, 1024 }
  0x13   : > { %v2298_v0 = vld [vmem:[%s3612_s1 + $0x10] sm:$0xff]   ;;  %v2299_v1 = vld [vmem:[%s3612_s1 + $0x8] sm:$0xff]   ;;  %v2300_v2 = vld [vmem:[%s3612_s1] sm:$0xff]   ;;  %s3632_s7 = smov (!%p220_p10, %s2045_s7), 127  ;;  %vm482_vm0 = vcmask 392192   ;;  %vm1444_vm1 = vcmask 523264  }
  0x14   : > { %2169 = vmatprep.subr.bf16.mxu0 %v2298_v0  ;;  %2251 = vmatprep.subr.bf16.mxu1 %v2298_v0  ;;  %s2046_s12 = sshll.u32 %s3632_s7, 2  ;;  %v2691_v35 = vld [vmem:[%s3613_s2] ss:$0 sm:$0xff]  ;;  %vm1844_vm2 = vcmask 1041409   ;;  %vm1846_vm3 = vcmask 1042434   ;;  %vm1848_vm4 = vcmask 1043459  }
  0x15   : > { %2170 = vmatpush3.bf16.msra.mxu0 %v2298_v0  ;;  %2254 = vmatpush3.bf16.msra.mxu1 %v2298_v0  ;;  %s2622_s15 = scalar_lea.vmem %s3611_s0, %s2046_s12  ;;  %vm1850_vm5 = vcmask 1044484   ;;  %vm1852_vm6 = vcmask 1045509   ;;  %vm1854_vm7 = vcmask 1046534   ;;  %vm1856_vm8 = vcmask 1047559   ;;  %s216_s12 = sand.u32 1, %s2518_s19  }
  0x16   : > { %2171 = vmatprep.subr.bf16.mxu0 %v2299_v1  ;;  %2252 = vmatprep.subr.bf16.mxu1 %v2299_v1  ;;  %v2301_v3 = vld [vmem:[%s2622_s15] sm:$0xff]   ;;  %v2302_v4 = vld [vmem:[%s2622_s15 + $0x90] sm:$0xff]   ;;  %v2303_v5 = vld [vmem:[%s2622_s15 + $0x8] sm:$0xff]   ;;  %s2044_s13 = sshll.u32 %s216_s12, 5  ;;  %s3571_s6 = scalar_lea.sflag [#allocation3], %s216_s12 }
  0x17   : > { %2175 = vmatprep.mubr.msk.bf16.mxu0 %vm482_vm0, %v2301_v3  ;;  %2211 = vmatprep.mubr.msk.bf16.mxu1 %vm482_vm0, %v2302_v4  ;;  %v2304_v6 = vld [vmem:[%s2622_s15 + $0x98] sm:$0xff]   ;;  %v2305_v7 = vld [vmem:[%s2622_s15 + $0x10] sm:$0xff]   ;;  %v2306_v8 = vld [vmem:[%s2622_s15 + $0xa0] sm:$0xff]   ;;  %s218_s16 = scalar_lea.vmem [#allocation2], %s2044_s13 }
  0x18   : > { %v2307_v9 = vld [vmem:[%s2622_s15 + $0x18] sm:$0xff]   ;;  %v2308_v10 = vld [vmem:[%s2622_s15 + $0xa8] sm:$0xff]   ;;  %v2309_v11 = vld [vmem:[%s2622_s15 + $0x20] sm:$0xff]   ;;  %s1978_s17 = sshll.u32 %s218_s16, 4  ;;  %s3564_s17 = int_to_ptr.vmem [resolvable:$true] %s1978_s17 }
  0x19   : > { %2172 = vmatpush3.bf16.msra.mxu0 %v2299_v1  ;;  %2255 = vmatpush3.bf16.msra.mxu1 %v2299_v1  ;;  %v2310_v12 = vld [vmem:[%s2622_s15 + $0xb0] sm:$0xff]   ;;  %v2311_v13 = vld [vmem:[%s2622_s15 + $0x28] sm:$0xff]   ;;  %v2312_v14 = vld [vmem:[%s2622_s15 + $0xb8] sm:$0xff]   ;;  %s2466_s7 = scalar_lea.vmem %s3564_s17, 512  ;;  %p2473_p0 = scmp.lt.s32.totalorder %s3564_s17, %s2471_s8 }
  0x1a   : > { %2173 = vmatprep.subr.bf16.mxu0 %v2300_v2  ;;  %2253 = vmatprep.subr.bf16.mxu1 %v2300_v2  ;;  %v2313_v15 = vld [vmem:[%s2622_s15 + $0x30] sm:$0xff]   ;;  %v2314_v16 = vld [vmem:[%s2622_s15 + $0xc0] sm:$0xff]   ;;  %v2315_v17 = vld [vmem:[%s2622_s15 + $0x38] sm:$0xff]   ;;  %p2467_p11 = scmp.ne.s32.totalorder %s3564_s17, %s2466_s7  ;;  %p2474_p1 = scmp.lt.s32.totalorder %s2472_s9, %s2466_s7 }
  0x1b   : > { %v2316_v18 = vld [vmem:[%s2622_s15 + $0xc8] sm:$0xff]   ;;  %v2317_v19 = vld [vmem:[%s2622_s15 + $0x40] sm:$0xff]   ;;  %v2318_v20 = vld [vmem:[%s2622_s15 + $0xd0] sm:$0xff]  }
  0x1c   : > { %v2319_v21 = vld [vmem:[%s2622_s15 + $0x48] sm:$0xff]   ;;  %v2320_v22 = vld [vmem:[%s2622_s15 + $0xd8] sm:$0xff]   ;;  %v2321_v23 = vld [vmem:[%s2622_s15 + $0x50] sm:$0xff]   ;;  %p2468_p12 = pnand %p2467_p11, %p2599_p5  ;;  %p2475_p2 = por %p2474_p1, %p2473_p0 }
  0x1d   : > { %2174 = vmatpush3.bf16.msra.mxu0 %v2300_v2  ;;  %2256 = vmatpush3.bf16.msra.mxu1 %v2300_v2  ;;  %v2322_v24 = vld [vmem:[%s2622_s15 + $0xe0] sm:$0xff]   ;;  %v2323_v25 = vld [vmem:[%s2622_s15 + $0x58] sm:$0xff]   ;;  %v2324_v26 = vld [vmem:[%s2622_s15 + $0xe8] sm:$0xff]  }
  0x1e   : > { %v2325_v27 = vld [vmem:[%s2622_s15 + $0x60] sm:$0xff]   ;;  %v2326_v28 = vld [vmem:[%s2622_s15 + $0xf0] sm:$0xff]   ;;  %v2327_v29 = vld [vmem:[%s2622_s15 + $0x68] sm:$0xff]   ;;  %p2469_p13 = pneg %p2468_p12 }
  0x1f   : > { %v2328_v30 = vld [vmem:[%s2622_s15 + $0xf8] sm:$0xff]   ;;  %v2329_v31 = vld [vmem:[%s2622_s15 + $0x70] sm:$0xff]   ;;  %v2331_v33 = vld [vmem:[%s2622_s15 + $0x80] sm:$0xff]  }
  0x20   : > { %2176 = vmatmul.mubr.msk.bf16.vlgmr.msra.gmra.mxu0 %vm482_vm0, %v2303_v5  ;;  %2212 = vmatmul.mubr.msk.bf16.vlgmr.msra.gmra.mxu1 %vm482_vm0, %v2304_v6  ;;  %v2330_v32 = vld [vmem:[%s2622_s15 + $0x78] sm:$0xff]   ;;  %v2332_v34 = vld [vmem:[%s2622_s15 + $0x88] sm:$0xff]   ;;  %p2476_p3 = pnand %p2475_p2, %p2469_p13 }
  0x21   : > { %2179 = vmatprep.mubr.msk.bf16.mxu0 %vm482_vm0, %v2305_v7  ;;  %2215 = vmatprep.mubr.msk.bf16.mxu1 %vm482_vm0, %v2306_v8 }
  0x28   : > { %2180 = vmatmul.mubr.msk.bf16.gmra.mxu0 %vm482_vm0, %v2307_v9  ;;  %2216 = vmatmul.mubr.msk.bf16.gmra.mxu1 %vm482_vm0, %v2308_v10 }
  0x29   : > { %2183 = vmatprep.mubr.msk.bf16.mxu0 %vm482_vm0, %v2309_v11  ;;  %2219 = vmatprep.mubr.msk.bf16.mxu1 %vm482_vm0, %v2310_v12 }
  0x30   : > { %2184 = vmatmul.mubr.msk.bf16.gmra.mxu0 %vm482_vm0, %v2311_v13  ;;  %2220 = vmatmul.mubr.msk.bf16.gmra.mxu1 %vm482_vm0, %v2312_v14 }
  0x31   : > { %2187 = vmatprep.mubr.msk.bf16.mxu0 %vm482_vm0, %v2313_v15  ;;  %2223 = vmatprep.mubr.msk.bf16.mxu1 %vm482_vm0, %v2314_v16 }
  0x38   : > { %2188 = vmatmul.mubr.msk.bf16.gmra.mxu0 %vm482_vm0, %v2315_v17  ;;  %2224 = vmatmul.mubr.msk.bf16.gmra.mxu1 %vm482_vm0, %v2316_v18 }
  0x39   : > { %2191 = vmatprep.mubr.msk.bf16.mxu0 %vm482_vm0, %v2317_v19  ;;  %2227 = vmatprep.mubr.msk.bf16.mxu1 %vm482_vm0, %v2318_v20 }
  0x40   : > { %2192 = vmatmul.mubr.msk.bf16.gmra.mxu0 %vm482_vm0, %v2319_v21  ;;  %2228 = vmatmul.mubr.msk.bf16.gmra.mxu1 %vm482_vm0, %v2320_v22 }
  0x41   : > { %2195 = vmatprep.mubr.msk.bf16.mxu0 %vm482_vm0, %v2321_v23  ;;  %2231 = vmatprep.mubr.msk.bf16.mxu1 %vm482_vm0, %v2322_v24 }
  0x48   : > { %2196 = vmatmul.mubr.msk.bf16.gmra.mxu0 %vm482_vm0, %v2323_v25  ;;  %2232 = vmatmul.mubr.msk.bf16.gmra.mxu1 %vm482_vm0, %v2324_v26 }
  0x49   : > { %2199 = vmatprep.mubr.msk.bf16.mxu0 %vm482_vm0, %v2325_v27  ;;  %2235 = vmatprep.mubr.msk.bf16.mxu1 %vm482_vm0, %v2326_v28 }
  0x50   : > { %2200 = vmatmul.mubr.msk.bf16.gmra.mxu0 %vm482_vm0, %v2327_v29  ;;  %2236 = vmatmul.mubr.msk.bf16.gmra.mxu1 %vm482_vm0, %v2328_v30 }
  0x51   : > { %2203 = vmatprep.mubr.msk.bf16.mxu0 %vm482_vm0, %v2329_v31 }
  0x58   : > { %2204 = vmatmul.mubr.msk.bf16.gmra.mxu0 %vm482_vm0, %v2330_v32 }
  0x59   : > { %2207 = vmatprep.mubr.msk.bf16.mxu0 %vm482_vm0, %v2331_v33 }
  0x60   : > { %2208 = vmatmul.mubr.msk.bf16.gmra.mxu0 %vm482_vm0, %v2332_v34 }
  0xe0   : > { %v2177_v36 = vpop.f32.mrf.mxu0  ;;  %v2213_v37 = vpop.f32.mrf.mxu1 }
  0xe1   : > { %v2694_v38 = vadd.f32 %v2177_v36, %v2691_v35  ;;  %v2697_v39 = vadd.f32 %v2213_v37, %v2691_v35 }
  0xe2   : > { %v613_v40 = vpop.f32.mrf.mxu0  ;;  %v757_v41 = vpop.f32.mrf.mxu1 }
  0xe3   : > { %v870_v42 = vmul.f32 %v2694_v38, %v2694_v38  ;;  %v906_v43 = vmul.f32 %v2697_v39, %v2697_v39  ;;  %v2704_v44 = vadd.f32 %v2691_v35, %v613_v40  ;;  %v2707_v45 = vadd.f32 %v2691_v35, %v757_v41 }
  0xe4   : > { %v2178_v46 = vpop.f32.mrf.mxu0  ;;  %v2214_v47 = vpop.f32.mrf.mxu1 }
  0xe5   : > { %v934_v48 = vmul.f32 %v870_v42, %v2694_v38  ;;  %v970_v49 = vmul.f32 %v906_v43, %v2697_v39  ;;  %v868_v50 = vmul.f32 %v2704_v44, %v2704_v44  ;;  %v904_v51 = vmul.f32 %v2707_v45, %v2707_v45 }
  0xe6   : > { %v2716_v52 = vadd.f32 %v2178_v46, %v2691_v35  ;;  %v2719_v53 = vadd.f32 %v2214_v47, %v2691_v35  ;;  %v616_v54 = vpop.f32.mrf.mxu0  ;;  %v760_v55 = vpop.f32.mrf.mxu1 }
  0xe7   : > { %v998_v56 = vmul.f32 0.044715, %v934_v48  ;;  %v1034_v57 = vmul.f32 0.044715, %v970_v49  ;;  %v932_v58 = vmul.f32 %v868_v50, %v2704_v44  ;;  %v968_v59 = vmul.f32 %v904_v51, %v2707_v45 }
  0xe8   : > { %v871_v60 = vmul.f32 %v2716_v52, %v2716_v52  ;;  %v907_v61 = vmul.f32 %v2719_v53, %v2719_v53  ;;  %v2728_v62 = vadd.f32 %v2691_v35, %v616_v54  ;;  %v2731_v63 = vadd.f32 %v2691_v35, %v760_v55  ;;  %v2181_v0 = vpop.f32.mrf.mxu0  ;;  %v2217_v5 = vpop.f32.mrf.mxu1 }
  0xe9   : > { %v1062_v1 = vadd.f32 %v998_v56, %v2694_v38  ;;  %v1098_v2 = vadd.f32 %v1034_v57, %v2697_v39  ;;  %v996_v3 = vmul.f32 0.044715, %v932_v58  ;;  %v1032_v4 = vmul.f32 0.044715, %v968_v59 }
  0xea   : > { %v935_v6 = vmul.f32 %v871_v60, %v2716_v52  ;;  %v971_v7 = vmul.f32 %v907_v61, %v2719_v53  ;;  %v869_v8 = vmul.f32 %v2728_v62, %v2728_v62  ;;  %v905_v9 = vmul.f32 %v2731_v63, %v2731_v63  ;;  %v629_v14 = vpop.f32.mrf.mxu0  ;;  %v773_v22 = vpop.f32.mrf.mxu1 }
  0xeb   : > { %v1126_v10 = vmul.f32 0.7978846, %v1062_v1  ;;  %v1162_v11 = vmul.f32 0.7978846, %v1098_v2  ;;  %v1060_v12 = vadd.f32 %v996_v3, %v2704_v44  ;;  %v1096_v13 = vadd.f32 %v1032_v4, %v2707_v45 }
  0xec   : > { %v999_v15 = vmul.f32 0.044715, %v935_v6  ;;  %v1035_v16 = vmul.f32 0.044715, %v971_v7  ;;  %v933_v17 = vmul.f32 %v869_v8, %v2728_v62  ;;  %v969_v18 = vmul.f32 %v905_v9, %v2731_v63  ;;  %v2182_v29 = vpop.f32.mrf.mxu0  ;;  %v2218_v40 = vpop.f32.mrf.mxu1 }
  0xed   : > { %2337 = vtanh.f32 %v1126_v10  ;;  %v1124_v19 = vmul.f32 0.7978846, %v1060_v12  ;;  %v1160_v20 = vmul.f32 0.7978846, %v1096_v13  ;;  %v2746_v21 = vadd.f32 %v2181_v0, %v2691_v35 }
  0xee   : > { %2339 = vtanh.f32 %v1162_v11  ;;  %v1063_v23 = vadd.f32 %v999_v15, %v2716_v52  ;;  %v1099_v24 = vadd.f32 %v1035_v16, %v2719_v53  ;;  %v997_v25 = vmul.f32 0.044715, %v933_v17  ;;  %v632_v49 = vpop.f32.mrf.mxu0  ;;  %v776_v57 = vpop.f32.mrf.mxu1 }
  0xef   : > { %2341 = vtanh.f32 %v1124_v19  ;;  %v1033_v26 = vmul.f32 0.044715, %v969_v18  ;;  %v874_v27 = vmul.f32 %v2746_v21, %v2746_v21  ;;  %v2753_v28 = vadd.f32 %v2217_v5, %v2691_v35 }
  0xf0   : > { %2343 = vtanh.f32 %v1160_v20  ;;  %v1127_v30 = vmul.f32 0.7978846, %v1063_v23  ;;  %v1163_v31 = vmul.f32 0.7978846, %v1099_v24  ;;  %v1061_v32 = vadd.f32 %v997_v25, %v2728_v62 }
  0xf1   : > { %v1097_v33 = vadd.f32 %v1033_v26, %v2731_v63  ;;  %v938_v34 = vmul.f32 %v874_v27, %v2746_v21  ;;  %v910_v36 = vmul.f32 %v2753_v28, %v2753_v28  ;;  %v2761_v37 = vadd.f32 %v2691_v35, %v629_v14 }
  0xf2   : > { %2345 = vtanh.f32 %v1127_v30  ;;  %v1125_v41 = vmul.f32 0.7978846, %v1061_v32  ;;  %v2764_v42 = vadd.f32 %v2691_v35, %v773_v22  ;;  %v2767_v43 = vadd.f32 %v2182_v29, %v2691_v35 }
  0xf3   : > { %2347 = vtanh.f32 %v1163_v31  ;;  %v1161_v46 = vmul.f32 0.7978846, %v1097_v33  ;;  %v1002_v47 = vmul.f32 0.044715, %v938_v34  ;;  %v974_v48 = vmul.f32 %v910_v36, %v2753_v28 }
  0xf4   : > { %2349 = vtanh.f32 %v1125_v41  ;;  %v872_v50 = vmul.f32 %v2761_v37, %v2761_v37  ;;  %v908_v51 = vmul.f32 %v2764_v42, %v2764_v42  ;;  %v875_v54 = vmul.f32 %v2767_v43, %v2767_v43 }
  0xf5   : > { %2351 = vtanh.f32 %v1161_v46  ;;  %v1038_v55 = vmul.f32 0.044715, %v974_v48  ;;  %v2777_v56 = vadd.f32 %v2218_v40, %v2691_v35  ;;  %v2782_v60 = vadd.f32 %v2691_v35, %v632_v49 }
  0xf6   : > { %v936_v58 = vmul.f32 %v872_v50, %v2761_v37  ;;  %v939_v59 = vmul.f32 %v875_v54, %v2767_v43  ;;  %v1066_v61 = vadd.f32 %v1002_v47, %v2746_v21  ;;  %v972_v0 = vmul.f32 %v908_v51, %v2764_v42 }
  0xf7   : > { %v911_v1 = vmul.f32 %v2777_v56, %v2777_v56  ;;  %v1102_v2 = vadd.f32 %v1038_v55, %v2753_v28  ;;  %v873_v4 = vmul.f32 %v2782_v60, %v2782_v60  ;;  %v2792_v5 = vadd.f32 %v2691_v35, %v776_v57 }
  0xf8   : > { %v1003_v3 = vmul.f32 0.044715, %v939_v59  ;;  %v1000_v6 = vmul.f32 0.044715, %v936_v58  ;;  %v1130_v11 = vmul.f32 0.7978846, %v1066_v61 }
  0xf9   : > { %v975_v9 = vmul.f32 %v911_v1, %v2777_v56  ;;  %v937_v12 = vmul.f32 %v873_v4, %v2782_v60  ;;  %v1166_v14 = vmul.f32 0.7978846, %v1102_v2  ;;  %v1036_v15 = vmul.f32 0.044715, %v972_v0 }
  0xfa   : > { %v2338_v7 = vpop.eup %2337  ;;  %v1067_v8 = vadd.f32 %v1003_v3, %v2767_v43  ;;  %v909_v16 = vmul.f32 %v2792_v5, %v2792_v5  ;;  %v1064_v19 = vadd.f32 %v1000_v6, %v2761_v37  ;;  %2353 = vtanh.f32 %v1130_v11 }
  0xfb   : > { %v2340_v10 = vpop.eup %2339  ;;  %v1254_v18 = vadd.f32 1.0, %v2338_v7  ;;  %v1039_v22 = vmul.f32 0.044715, %v975_v9  ;;  %v1001_v25 = vmul.f32 0.044715, %v937_v12  ;;  %2355 = vtanh.f32 %v1166_v14  ;;  %v2185_v7 = vpop.f32.mrf.mxu0 }
  0xfc   : > { %v2342_v13 = vpop.eup %2341  ;;  %v1131_v20 = vmul.f32 0.7978846, %v1067_v8  ;;  %v1290_v24 = vadd.f32 1.0, %v2340_v10  ;;  %v1100_v29 = vadd.f32 %v1036_v15, %v2764_v42  ;;  %v973_v30 = vmul.f32 %v909_v16, %v2792_v5 }
  0xfd   : > { %v2344_v17 = vpop.eup %2343  ;;  %v1318_v32 = vmul.f32 0.5, %v1254_v18  ;;  %v1252_v33 = vadd.f32 1.0, %v2342_v13  ;;  %v1128_v36 = vmul.f32 0.7978846, %v1064_v19  ;;  %v1103_v47 = vadd.f32 %v1039_v22, %v2777_v56 }
  0xfe   : > { %2357 = vtanh.f32 %v1131_v20  ;;  %v1354_v48 = vmul.f32 0.5, %v1290_v24  ;;  %v1065_v51 = vadd.f32 %v1001_v25, %v2782_v60  ;;  %v1288_v54 = vadd.f32 1.0, %v2344_v17 }
  0xff   : > { %v2346_v23 = vpop.eup %2345  ;;  %v1164_v57 = vmul.f32 0.7978846, %v1100_v29  ;;  %v1382_v0 = vmul.f32 %v1318_v32, %v2694_v38  ;;  %v1167_v2 = vmul.f32 0.7978846, %v1103_v47  ;;  %v1316_v4 = vmul.f32 0.5, %v1252_v33 }
 0x100   : > { %v2348_v26 = vpop.eup %2347  ;;  %v1255_v27 = vadd.f32 1.0, %v2346_v23  ;;  %v1129_v61 = vmul.f32 0.7978846, %v1065_v51  ;;  %v1418_v3 = vmul.f32 %v1354_v48, %v2697_v39  ;;  %2359 = vtanh.f32 %v1128_v36 }
 0x101   : > { %v2350_v31 = vpop.eup %2349  ;;  %v1291_v34 = vadd.f32 1.0, %v2348_v26  ;;  %v1037_v6 = vmul.f32 0.044715, %v973_v30  ;;  %v1352_v8 = vmul.f32 0.5, %v1288_v54  ;;  %2361 = vtanh.f32 %v1164_v57 }
 0x102   : > { %v2352_v40 = vpop.eup %2351  ;;  %v1319_v41 = vmul.f32 0.5, %v1255_v27  ;;  %v1253_v46 = vadd.f32 1.0, %v2350_v31  ;;  %2363 = vtanh.f32 %v1129_v61  ;;  %v1454_v38 = vsel %vm1444_vm1, %v1382_v0, 0.0 }
 0x103   : > { %v1355_v49 = vmul.f32 0.5, %v1291_v34  ;;  %v1289_v50 = vadd.f32 1.0, %v2352_v40  ;;  %2365 = vtanh.f32 %v1167_v2  ;;  %v2814_v39 = vadd.f32 %v2185_v7, %v2691_v35  ;;  %v2221_v34 = vpop.f32.mrf.mxu1  ;;  %v645_v2 = vpop.f32.mrf.mxu0 }
 0x104   : > { %v1383_v55 = vmul.f32 %v1319_v41, %v2716_v52  ;;  %v1317_v59 = vmul.f32 0.5, %v1253_v46  ;;  %v1616_v11 = vsel %vm1444_vm1, %v1418_v3, 0.0  ;;  %v1380_v12 = vmul.f32 %v1316_v4, %v2704_v44 }
 0x105   : > { %v1419_v58 = vmul.f32 %v1355_v49, %v2719_v53  ;;  %v1353_v1 = vmul.f32 0.5, %v1289_v50  ;;  %v1101_v14 = vadd.f32 %v1037_v6, %v2792_v5  ;;  %v1416_v16 = vmul.f32 %v1352_v8, %v2707_v45  ;;  %v789_v7 = vpop.f32.mrf.mxu1 }
 0x106   : > { %v1455_v9 = vsel %vm1444_vm1, %v1383_v55, 0.0  ;;  %v1381_v53 = vmul.f32 %v1317_v59, %v2728_v62  ;;  %v878_v19 = vmul.f32 %v2814_v39, %v2814_v39  ;;  %v1445_v22 = vsel %vm1444_vm1, %v1380_v12, 0.0 }
 0x107   : > { %v1617_v52 = vsel %vm1444_vm1, %v1419_v58, 0.0  ;;  %v1417_v10 = vmul.f32 %v1353_v1, %v2731_v63  ;;  %v1456_v13 = vadd.f32 %v1455_v9, %v1454_v38  ;;  %v2354_v15 = vpop.eup %2353  ;;  %v1165_v24 = vmul.f32 0.7978846, %v1101_v14 }
 0x108   : > { %v1618_v62 = vadd.f32 %v1617_v52, %v1616_v11  ;;  %v2356_v17 = vpop.eup %2355  ;;  %v1446_v18 = vsel %vm1444_vm1, %v1381_v53, 0.0  ;;  %v1258_v44 = vadd.f32 1.0, %v2354_v15  ;;  %v1607_v25 = vsel %vm1444_vm1, %v1416_v16, 0.0 }
 0x109   : > { %v1608_v63 = vsel %vm1444_vm1, %v1417_v10, 0.0  ;;  %v1457_v23 = vrot.slane %v1456_v13, 4  ;;  %v1447_v27 = vadd.f32 %v1446_v18, %v1445_v22  ;;  %v1294_v29 = vadd.f32 1.0, %v2356_v17 }
 0x10a   : > { %v1619_v26 = vrot.slane %v1618_v62, 4  ;;  %v1609_v45 = vadd.f32 %v1608_v63, %v1607_v25  ;;  %v942_v31 = vmul.f32 %v878_v19, %v2814_v39  ;;  %v1322_v33 = vmul.f32 0.5, %v1258_v44 }
 0x10b   : > { %v2358_v20 = vpop.eup %2357  ;;  %v1458_v32 = vadd.f32 %v1457_v23, %v1456_v13  ;;  %2367 = vtanh.f32 %v1165_v24  ;;  %v1448_v41 = vrot.slane %v1447_v27, 4  ;;  %v1358_v48 = vmul.f32 0.5, %v1294_v29 }
 0x10c   : > { %v1259_v30 = vadd.f32 1.0, %v2358_v20  ;;  %v1620_v40 = vadd.f32 %v1619_v26, %v1618_v62  ;;  %v1610_v47 = vrot.slane %v1609_v45, 4  ;;  %v1006_v51 = vmul.f32 0.044715, %v942_v31 }
 0x10d   : > { %v2360_v36 = vpop.eup %2359  ;;  %v2828_v54 = vadd.f32 %v2221_v34, %v2691_v35  ;;  %v1459_v57 = vrot.slane %v1458_v32, 2  ;;  %v1386_v58 = vmul.f32 %v1322_v33, %v2746_v21  ;;  %v1449_v0 = vadd.f32 %v1448_v41, %v1447_v27  ;;  %v2222_v33 = vpop.f32.mrf.mxu1 }
 0x10e   : > { %v2362_v46 = vpop.eup %2361  ;;  %v1323_v50 = vmul.f32 0.5, %v1259_v30  ;;  %v1256_v59 = vadd.f32 1.0, %v2360_v36  ;;  %v1621_v61 = vrot.slane %v1620_v40, 2  ;;  %v1611_v3 = vadd.f32 %v1610_v47, %v1609_v45 }
 0x10f   : > { %v2364_v49 = vpop.eup %2363  ;;  %v1292_v1 = vadd.f32 1.0, %v2362_v46  ;;  %v1422_v4 = vmul.f32 %v1358_v48, %v2753_v28  ;;  %v1070_v52 = vadd.f32 %v1006_v51, %v2814_v39  ;;  %v914_v53 = vmul.f32 %v2828_v54, %v2828_v54 }
 0x110   : > { %v2366_v55 = vpop.eup %2365  ;;  %v1257_v6 = vadd.f32 1.0, %v2364_v49  ;;  %v1387_v8 = vmul.f32 %v1323_v50, %v2767_v43  ;;  %v1460_v38 = vadd.f32 %v1459_v57, %v1458_v32  ;;  %v1472_v21 = vsel %vm1444_vm1, %v1386_v58, 0.0  ;;  %v2186_v43 = vpop.f32.mrf.mxu0 }
 0x111   : > { %v1295_v9 = vadd.f32 1.0, %v2366_v55  ;;  %v1320_v10 = vmul.f32 0.5, %v1256_v59  ;;  %v2838_v11 = vadd.f32 %v2691_v35, %v645_v2  ;;  %v1622_v12 = vadd.f32 %v1621_v61, %v1620_v40  ;;  %v792_v2 = vpop.f32.mrf.mxu1 }
 0x112   : > { %v1450_v13 = vrot.slane %v1449_v0, 2  ;;  %v1356_v28 = vmul.f32 0.5, %v1292_v1  ;;  %v2841_v14 = vadd.f32 %v2691_v35, %v789_v7  ;;  %v1612_v15 = vrot.slane %v1611_v3, 2  ;;  %v648_v48 = vpop.f32.mrf.mxu0 }
 0x113   : > { %v1634_v16 = vsel %vm1444_vm1, %v1422_v4, 0.0  ;;  %v1321_v62 = vmul.f32 0.5, %v1257_v6  ;;  %v876_v17 = vmul.f32 %v2838_v11, %v2838_v11  ;;  %v1473_v18 = vsel %vm1444_vm1, %v1387_v8, 0.0 }
 0x114   : > { %v1359_v63 = vmul.f32 0.5, %v1295_v9  ;;  %v1134_v19 = vmul.f32 0.7978846, %v1070_v52  ;;  %v978_v20 = vmul.f32 %v914_v53, %v2828_v54  ;;  %v1461_v22 = vrot.slane %v1460_v38, 1  ;;  %v2189_v8 = vpop.f32.mrf.mxu0 }
 0x115   : > { %v1384_v23 = vmul.f32 %v1320_v10, %v2761_v37  ;;  %v940_v44 = vmul.f32 %v876_v17, %v2838_v11  ;;  %v2851_v24 = vadd.f32 %v2186_v43, %v2691_v35  ;;  %v1623_v26 = vrot.slane %v1622_v12, 1 }
 0x116   : > { %v1451_v27 = vadd.f32 %v1450_v13, %v1449_v0  ;;  %v1420_v45 = vmul.f32 %v1356_v28, %v2764_v42  ;;  %v912_v29 = vmul.f32 %v2841_v14, %v2841_v14  ;;  %v1474_v30 = vadd.f32 %v1473_v18, %v1472_v21 }
 0x117   : > { %v1385_v31 = vmul.f32 %v1321_v62, %v2782_v60  ;;  %v1004_v32 = vmul.f32 0.044715, %v940_v44  ;;  %v879_v37 = vmul.f32 %v2851_v24, %v2851_v24  ;;  %v2859_v34 = vadd.f32 %v1612_v15, %v1611_v3  ;;  %v2225_v62 = vpop.f32.mrf.mxu1 }
 0x118   : > { %v2368_v25 = vpop.eup %2367  ;;  %v1423_v36 = vmul.f32 %v1359_v63, %v2777_v56  ;;  %2369 = vtanh.f32 %v1134_v19  ;;  %v1042_v40 = vmul.f32 0.044715, %v978_v20  ;;  %v1463_v41 = vsel %vm1444_vm1, %v1384_v23, 0.0 }
 0x119   : > { %v1293_v42 = vadd.f32 1.0, %v2368_v25  ;;  %v1068_v46 = vadd.f32 %v1004_v32, %v2838_v11  ;;  %v943_v47 = vmul.f32 %v879_v37, %v2851_v24  ;;  %v2865_v60 = vadd.f32 %v1461_v22, %v1460_v38 }
 0x11a   : > { %v1452_v49 = vrot.slane %v1451_v27, 1  ;;  %v976_v50 = vmul.f32 %v912_v29, %v2841_v14  ;;  %v2869_v51 = vadd.f32 %v2222_v33, %v2691_v35  ;;  %v2872_v56 = vsel %vm1444_vm1, %v1420_v45, 0.0 }
 0x11b   : > { %v1475_v55 = vrot.slane %v1474_v30, 4  ;;  %v1464_v57 = vsel %vm1444_vm1, %v1385_v31, 0.0  ;;  %v1007_v58 = vmul.f32 0.044715, %v943_v47  ;;  %v1635_v59 = vsel %vm1444_vm1, %v1423_v36, 0.0  ;;  %v805_v36 = vpop.f32.mrf.mxu1 }
 0x11c   : > { %v1106_v61 = vadd.f32 %v1042_v40, %v2828_v54  ;;  %v1132_v0 = vmul.f32 0.7978846, %v1068_v46  ;;  %v915_v1 = vmul.f32 %v2869_v51, %v2869_v51  ;;  %v2879_v3 = vadd.f32 %v1623_v26, %v1622_v12 }
 0x11d   : > { %v1614_v4 = vrot.slane %v2859_v34, 1  ;;  %v1357_v6 = vmul.f32 0.5, %v1293_v42  ;;  %v1071_v7 = vadd.f32 %v1007_v58, %v2851_v24  ;;  %v1465_v9 = vadd.f32 %v1464_v57, %v1463_v41 }
 0x11e   : > { %v1040_v52 = vmul.f32 0.044715, %v976_v50  ;;  %v979_v53 = vmul.f32 %v915_v1, %v2869_v51  ;;  %v2885_v38 = vadd.f32 %v2691_v35, %v648_v48  ;;  %v2887_v21 = vadd.f32 %v1452_v49, %v1451_v27 }
 0x11f   : > { %v1636_v10 = vadd.f32 %v1635_v59, %v1634_v16  ;;  %v1135_v13 = vmul.f32 0.7978846, %v1071_v7  ;;  %v2890_v12 = vadd.f32 %v2691_v35, %v792_v2  ;;  %v1476_v28 = vadd.f32 %v1475_v55, %v1474_v30  ;;  %v661_v16 = vpop.f32.mrf.mxu0 }
 0x120   : > { %v1170_v43 = vmul.f32 0.7978846, %v1106_v61  ;;  %2371 = vtanh.f32 %v1132_v0  ;;  %v1043_v15 = vmul.f32 0.044715, %v979_v53  ;;  %v877_v17 = vmul.f32 %v2885_v38, %v2885_v38 }
 0x121   : > { %2373 = vtanh.f32 %v1135_v13  ;;  %v913_v18 = vmul.f32 %v2890_v12, %v2890_v12  ;;  %v2897_v63 = vadd.f32 %v2189_v8, %v2691_v35  ;;  %v1466_v19 = vrot.slane %v1465_v9, 4  ;;  %v2190_v40 = vpop.f32.mrf.mxu0  ;;  %v2226_v13 = vpop.f32.mrf.mxu1 }
 0x122   : > { %v1421_v20 = vmul.f32 %v1357_v6, %v2792_v5  ;;  %v1104_v22 = vadd.f32 %v1040_v52, %v2841_v14  ;;  %v1107_v23 = vadd.f32 %v1043_v15, %v2869_v51  ;;  %v941_v44 = vmul.f32 %v877_v17, %v2885_v38 }
 0x123   : > { %v977_v25 = vmul.f32 %v913_v18, %v2890_v12  ;;  %v882_v26 = vmul.f32 %v2897_v63, %v2897_v63  ;;  %v2907_v27 = vadd.f32 %v2225_v62, %v2691_v35  ;;  %v1477_v45 = vrot.slane %v1476_v28, 2 }
 0x124   : > { %v1637_v29 = vrot.slane %v1636_v10, 4  ;;  %2375 = vtanh.f32 %v1170_v43  ;;  %v1171_v30 = vmul.f32 0.7978846, %v1107_v23  ;;  %v1005_v5 = vmul.f32 0.044715, %v941_v44  ;;  %v664_v44 = vpop.f32.mrf.mxu0 }
 0x125   : > { %v2370_v31 = vpop.eup %2369  ;;  %v1041_v32 = vmul.f32 0.044715, %v977_v25  ;;  %v946_v37 = vmul.f32 %v882_v26, %v2897_v63  ;;  %v918_v33 = vmul.f32 %v2907_v27, %v2907_v27  ;;  %v1467_v41 = vadd.f32 %v1466_v19, %v1465_v9 }
 0x126   : > { %v1626_v42 = vsel %vm1444_vm1, %v1421_v20, 0.0  ;;  %v1168_v46 = vmul.f32 0.7978846, %v1104_v22  ;;  %2377 = vtanh.f32 %v1171_v30  ;;  %v1069_v47 = vadd.f32 %v1005_v5, %v2885_v38 }
 0x127   : > { %v1105_v48 = vadd.f32 %v1041_v32, %v2890_v12  ;;  %v1010_v49 = vmul.f32 0.044715, %v946_v37  ;;  %v982_v50 = vmul.f32 %v918_v33, %v2907_v27  ;;  %v1262_v55 = vadd.f32 1.0, %v2370_v31  ;;  %v808_v37 = vpop.f32.mrf.mxu1 }
 0x128   : > { %v2917_v57 = vadd.f32 %v2691_v35, %v661_v16  ;;  %v2920_v58 = vadd.f32 %v2691_v35, %v805_v36  ;;  %v2923_v59 = vadd.f32 %v2190_v40, %v2691_v35  ;;  %v2925_v61 = vadd.f32 %v1637_v29, %v1636_v10 }
 0x129   : > { %v1133_v0 = vmul.f32 0.7978846, %v1069_v47  ;;  %v1169_v1 = vmul.f32 0.7978846, %v1105_v48  ;;  %v1046_v2 = vmul.f32 0.044715, %v982_v50  ;;  %v1074_v6 = vadd.f32 %v1010_v49, %v2897_v63 }
 0x12a   : > { %v880_v7 = vmul.f32 %v2917_v57, %v2917_v57  ;;  %v916_v8 = vmul.f32 %v2920_v58, %v2920_v58  ;;  %v883_v9 = vmul.f32 %v2923_v59, %v2923_v59  ;;  %v1734_v52 = vpack.c.bf16 %v2865_v60, %v2865_v60 }
 0x12b   : > { %v2936_v53 = vadd.f32 %v1477_v45, %v1476_v28  ;;  %v2939_v10 = vadd.f32 %v1626_v42, %v2872_v56  ;;  %2379 = vtanh.f32 %v1133_v0  ;;  %v1468_v43 = vrot.slane %v1467_v41, 2 }
 0x12c   : > { %2381 = vtanh.f32 %v1169_v1  ;;  %v1110_v15 = vadd.f32 %v1046_v2, %v2907_v27  ;;  %v980_v62 = vmul.f32 %v916_v8, %v2920_v58  ;;  %v1733_v18 = vpack.c.bf16 %v2887_v21, %v2887_v21 }
 0x12d   : > { %v2372_v17 = vpop.eup %2371  ;;  %v1639_v16 = vrot.slane %v2925_v61, 2  ;;  %v1326_v19 = vmul.f32 0.5, %v1262_v55  ;;  %2383 = vtanh.f32 %v1168_v46  ;;  %v1138_v20 = vmul.f32 0.7978846, %v1074_v6 }
 0x12e   : > { %v2374_v28 = vpop.eup %2373  ;;  %v944_v56 = vmul.f32 %v880_v7, %v2917_v57  ;;  %v947_v22 = vmul.f32 %v883_v9, %v2923_v59  ;;  %v2949_v23 = vadd.f32 %v2226_v13, %v2691_v35  ;;  %v1479_v25 = vrot.slane %v2936_v53, 1  ;;  %v2193_v7 = vpop.f32.mrf.mxu0 }
 0x12f   : > { %v1628_v26 = vrot.slane %v2939_v10, 4  ;;  %v1263_v45 = vadd.f32 1.0, %v2374_v28  ;;  %v1044_v29 = vmul.f32 0.044715, %v980_v62  ;;  %v2953_v30 = vadd.f32 %v1468_v43, %v1467_v41 }
 0x130   : > { %v1174_v31 = vmul.f32 0.7978846, %v1110_v15  ;;  %v1011_v5 = vmul.f32 0.044715, %v947_v22  ;;  %v919_v32 = vmul.f32 %v2949_v23, %v2949_v23  ;;  %v1390_v36 = vmul.f32 %v1326_v19, %v2814_v39 }
 0x131   : > { %v2376_v33 = vpop.eup %2375  ;;  %v1260_v40 = vadd.f32 1.0, %v2372_v17  ;;  %v1327_v42 = vmul.f32 0.5, %v1263_v45  ;;  %v2959_v46 = vadd.f32 %v2691_v35, %v664_v44  ;;  %2385 = vtanh.f32 %v1138_v20 }
 0x132   : > { %v1008_v47 = vmul.f32 0.044715, %v944_v56  ;;  %v1075_v48 = vadd.f32 %v1011_v5, %v2923_v59  ;;  %v983_v41 = vmul.f32 %v919_v32, %v2949_v23  ;;  %v1108_v55 = vadd.f32 %v1044_v29, %v2920_v58 }
 0x133   : > { %v2378_v49 = vpop.eup %2377  ;;  %v1391_v50 = vmul.f32 %v1327_v42, %v2851_v24  ;;  %v881_v0 = vmul.f32 %v2959_v46, %v2959_v46  ;;  %v2968_v39 = vadd.f32 %v2691_v35, %v808_v37  ;;  %v1298_v1 = vadd.f32 1.0, %v2376_v33 }
 0x134   : > { %v1299_v2 = vadd.f32 1.0, %v2378_v49  ;;  %2387 = vtanh.f32 %v1174_v31  ;;  %v1047_v6 = vmul.f32 0.044715, %v983_v41  ;;  %v1139_v9 = vmul.f32 0.7978846, %v1075_v48 }
 0x135   : > { %v1491_v8 = vsel %vm1444_vm1, %v1391_v50, 0.0  ;;  %v945_v13 = vmul.f32 %v881_v0, %v2959_v46  ;;  %v917_v24 = vmul.f32 %v2968_v39, %v2968_v39  ;;  %v1490_v43 = vsel %vm1444_vm1, %v1390_v36, 0.0 }
 0x136   : > { %v1324_v15 = vmul.f32 0.5, %v1260_v40  ;;  %v1072_v62 = vadd.f32 %v1008_v47, %v2917_v57  ;;  %v1111_v17 = vadd.f32 %v1047_v6, %v2949_v23  ;;  %v1172_v19 = vmul.f32 0.7978846, %v1108_v55 }
 0x137   : > { %v1009_v28 = vmul.f32 0.044715, %v945_v13  ;;  %v981_v20 = vmul.f32 %v917_v24, %v2968_v39  ;;  %v2979_v56 = vadd.f32 %v2193_v7, %v2691_v35  ;;  %v1362_v44 = vmul.f32 0.5, %v1298_v1 }
 0x138   : > { %v2380_v22 = vpop.eup %2379  ;;  %v1492_v45 = vadd.f32 %v1491_v8, %v1490_v43  ;;  %v1363_v29 = vmul.f32 0.5, %v1299_v2  ;;  %v1175_v31 = vmul.f32 0.7978846, %v1111_v17  ;;  %2389 = vtanh.f32 %v1139_v9  ;;  %v2229_v9 = vpop.f32.mrf.mxu1 }
 0x139   : > { %v2382_v5 = vpop.eup %2381  ;;  %v1261_v32 = vadd.f32 1.0, %v2380_v22  ;;  %v1073_v37 = vadd.f32 %v1009_v28, %v2959_v46  ;;  %v1045_v33 = vmul.f32 0.044715, %v981_v20  ;;  %v1480_v40 = vadd.f32 %v1479_v25, %v2936_v53 }
 0x13a   : > { %v2384_v36 = vpop.eup %2383  ;;  %v1136_v42 = vmul.f32 0.7978846, %v1072_v62  ;;  %2391 = vtanh.f32 %v1175_v31  ;;  %v886_v47 = vmul.f32 %v2979_v56, %v2979_v56  ;;  %v1388_v48 = vmul.f32 %v1324_v15, %v2838_v11 }
 0x13b   : > { %v1325_v41 = vmul.f32 0.5, %v1261_v32  ;;  %2393 = vtanh.f32 %v1172_v19  ;;  %v1137_v49 = vmul.f32 0.7978846, %v1073_v37  ;;  %v1493_v50 = vrot.slane %v1492_v45, 4  ;;  %v677_v37 = vpop.f32.mrf.mxu0 }
 0x13c   : > { %v1427_v55 = vmul.f32 %v1363_v29, %v2869_v51  ;;  %v1297_v0 = vadd.f32 1.0, %v2382_v5  ;;  %v1109_v1 = vadd.f32 %v1045_v33, %v2968_v39  ;;  %v1470_v2 = vrot.slane %v2953_v30, 1 }
 0x13d   : > { %v1629_v53 = vadd.f32 %v1628_v26, %v2939_v10  ;;  %v1426_v25 = vmul.f32 %v1362_v44, %v2828_v54  ;;  %v1389_v6 = vmul.f32 %v1325_v41, %v2885_v38  ;;  %v1296_v11 = vadd.f32 1.0, %v2384_v36 }
 0x13e   : > { %2395 = vtanh.f32 %v1136_v42  ;;  %v1173_v7 = vmul.f32 0.7978846, %v1109_v1  ;;  %v950_v8 = vmul.f32 %v886_v47, %v2979_v56  ;;  %v2386_v51 = vpop.eup %2385  ;;  %v2998_v13 = vadd.f32 %v1639_v16, %v2925_v61 }
 0x13f   : > { %v1481_v24 = vsel %vm1444_vm1, %v1388_v48, 0.0  ;;  %v1482_v10 = vsel %vm1444_vm1, %v1389_v6, 0.0  ;;  %2397 = vtanh.f32 %v1137_v49  ;;  %v1494_v54 = vadd.f32 %v1493_v50, %v1492_v45 }
 0x140   : > { %v1653_v38 = vsel %vm1444_vm1, %v1427_v55, 0.0  ;;  %v1361_v26 = vmul.f32 0.5, %v1297_v0  ;;  %2399 = vtanh.f32 %v1173_v7  ;;  %v1736_v15 = vpack.c.bf16 %v1480_v40, %v1480_v40 }
 0x141   : > { %v2388_v43 = vpop.eup %2387  ;;  %v1630_v62 = vrot.slane %v1629_v53, 2  ;;  %v1483_v17 = vadd.f32 %v1482_v10, %v1481_v24  ;;  %v3004_v19 = vadd.f32 %v2229_v9, %v2691_v35  ;;  %v1471_v61 = vadd.f32 %v1470_v2, %v2953_v30 }
 0x142   : > { %v1652_v16 = vsel %vm1444_vm1, %v1426_v25, 0.0  ;;  %v1360_v28 = vmul.f32 0.5, %v1296_v11  ;;  %v1014_v20 = vmul.f32 0.044715, %v950_v8  ;;  %v3011_v22 = vunpack.c.l.b16 %v1734_v52 }
 0x143   : > { %v3016_v44 = vadd.f32 %v1614_v4, %v2859_v34  ;;  %v1654_v45 = vadd.f32 %v1653_v38, %v1652_v16  ;;  %v1266_v29 = vadd.f32 1.0, %v2386_v51  ;;  %v3021_v30 = vunpack.c.l.b16 %v1733_v18  ;;  %v821_v38 = vpop.f32.mrf.mxu1 }
 0x144   : > { %v1495_v31 = vrot.slane %v1494_v54, 2  ;;  %v1425_v5 = vmul.f32 %v1361_v26, %v2890_v12  ;;  %v1302_v32 = vadd.f32 1.0, %v2388_v43  ;;  %v3024_v60 = vadd.f32 %v1630_v62, %v1629_v53 }
 0x145   : > { %v1484_v52 = vrot.slane %v1483_v17, 4  ;;  %v1078_v33 = vadd.f32 %v1014_v20, %v2979_v56  ;;  %v922_v34 = vmul.f32 %v3004_v19, %v3004_v19  ;;  %v2390_v4 = vpop.eup %2389  ;;  %v3029_v36 = vunpack.c.l.b16 %v1736_v15 }
 0x146   : > { %v1735_v18 = vpack.c.bf16 %v1471_v61, %v1471_v61  ;;  %v1424_v40 = vmul.f32 %v1360_v28, %v2841_v14  ;;  %v1655_v12 = vrot.slane %v1654_v45, 4  ;;  %v1330_v47 = vmul.f32 0.5, %v1266_v29 }
 0x147   : > { %v2392_v42 = vpop.eup %2391  ;;  %v986_v48 = vmul.f32 %v922_v34, %v3004_v19  ;;  %v3035_v41 = vadd.f32 %v2691_v35, %v677_v37  ;;  %v3037_v50 = vadd.f32 %v1495_v31, %v1494_v54  ;;  %v1644_v55 = vsel %vm1444_vm1, %v1425_v5, 0.0 }
 0x148   : > { %v2394_v49 = vpop.eup %2393  ;;  %v1366_v0 = vmul.f32 0.5, %v1302_v32  ;;  %v1303_v1 = vadd.f32 1.0, %v2392_v42  ;;  %v1485_v53 = vadd.f32 %v1484_v52, %v1483_v17  ;;  %v1267_v25 = vadd.f32 1.0, %v2390_v4  ;;  %v2194_v52 = vpop.f32.mrf.mxu0 }
 0x149   : > { %v1142_v14 = vmul.f32 0.7978846, %v1078_v33  ;;  %v3041_v6 = vunpack.c.l.b16 %v1735_v18  ;;  %v1643_v11 = vsel %vm1444_vm1, %v1424_v40, 0.0  ;;  %v1050_v8 = vmul.f32 0.044715, %v986_v48 }
 0x14a   : > { %v1367_v7 = vmul.f32 0.5, %v1303_v1  ;;  %v3044_v51 = vadd.f32 %v1655_v12, %v1654_v45  ;;  %v1645_v24 = vadd.f32 %v1644_v55, %v1643_v11  ;;  %v1394_v10 = vmul.f32 %v1330_v47, %v2897_v63  ;;  %v2230_v12 = vpop.f32.mrf.mxu1 }
 0x14b   : > { %v2396_v9 = vpop.eup %2395  ;;  %v884_v54 = vmul.f32 %v3035_v41, %v3035_v41  ;;  %v1497_v43 = vrot.slane %v3037_v50, 1  ;;  %v1430_v15 = vmul.f32 %v1366_v0, %v2907_v27  ;;  %v1300_v62 = vadd.f32 1.0, %v2394_v49 }
 0x14c   : > { %v2398_v26 = vpop.eup %2397  ;;  %v1114_v17 = vadd.f32 %v1050_v8, %v3004_v19  ;;  %v1486_v16 = vrot.slane %v1485_v53, 2  ;;  %v1331_v28 = vmul.f32 0.5, %v1267_v25  ;;  %2401 = vtanh.f32 %v1142_v14  ;;  %v680_v25 = vpop.f32.mrf.mxu0 }
 0x14d   : > { %v2400_v61 = vpop.eup %2399  ;;  %v948_v20 = vmul.f32 %v884_v54, %v3035_v41  ;;  %v1264_v45 = vadd.f32 1.0, %v2396_v9  ;;  %v1431_v63 = vmul.f32 %v1367_v7, %v2949_v23  ;;  %v3055_v31 = vadd.f32 %v2691_v35, %v821_v38 }
 0x14e   : > { %v1301_v29 = vadd.f32 1.0, %v2400_v61  ;;  %v1657_v5 = vrot.slane %v3044_v51, 2  ;;  %v1646_v32 = vrot.slane %v1645_v24, 4  ;;  %v1265_v27 = vadd.f32 1.0, %v2398_v26 }
 0x14f   : > { %v1178_v37 = vmul.f32 0.7978846, %v1114_v17  ;;  %v1508_v33 = vsel %vm1444_vm1, %v1394_v10, 0.0  ;;  %v1364_v34 = vmul.f32 0.5, %v1300_v62  ;;  %v1012_v18 = vmul.f32 0.044715, %v948_v20 }
 0x150   : > { %v1365_v4 = vmul.f32 0.5, %v1301_v29  ;;  %v1487_v40 = vadd.f32 %v1486_v16, %v1485_v53  ;;  %v1670_v42 = vsel %vm1444_vm1, %v1430_v15, 0.0  ;;  %v1395_v23 = vmul.f32 %v1331_v28, %v2923_v59  ;;  %v3069_v53 = vld [vmem:[%s3613_s2] ss:$0 sm:$0xff] }
 0x151   : > { %2403 = vtanh.f32 %v1178_v37  ;;  %v1328_v35 = vmul.f32 0.5, %v1264_v45  ;;  %v1671_v47 = vsel %vm1444_vm1, %v1431_v63, 0.0  ;;  %v1076_v48 = vadd.f32 %v1012_v18, %v3035_v41  ;;  %v824_v45 = vpop.f32.mrf.mxu1  ;;  %v2333_v63 = vld [vmem:[%s3614_s3 + $0x18] sm:$0xff]  }
 0x152   : > { %v920_v49 = vmul.f32 %v3055_v31, %v3055_v31  ;;  %v1647_v55 = vadd.f32 %v1646_v32, %v1645_v24  ;;  %v1329_v0 = vmul.f32 0.5, %v1265_v27  ;;  %v1429_v1 = vmul.f32 %v1365_v4, %v2968_v39  ;;  %2239 = vmatprep.subr.bf16.mxu1 %v2333_v63 }
 0x153   : > { %v3072_v59 = vadd.f32 %v3069_v53, %v2194_v52  ;;  %v1428_v14 = vmul.f32 %v1364_v34, %v2920_v58  ;;  %v1140_v11 = vmul.f32 0.7978846, %v1076_v48  ;;  %v3077_v8 = vadd.f32 %v3069_v53, %v2230_v12  ;;  %2240 = vmatpush3.bf16.msra.mxu1 %v2333_v63  ;;  %v2334_v48 = vld [vmem:[%s3614_s3 + $0x10] sm:$0xff]  }
 0x154   : > { %v984_v7 = vmul.f32 %v920_v49, %v3055_v31  ;;  %v1488_v9 = vrot.slane %v1487_v40, 1  ;;  %v1509_v39 = vsel %vm1444_vm1, %v1395_v23, 0.0  ;;  %v1672_v24 = vadd.f32 %v1671_v47, %v1670_v42  ;;  %v2233_v47 = vpop.f32.mrf.mxu1  ;;  %2241 = vmatprep.subr.bf16.mxu1 %v2334_v48 }
 0x155   : > { %v887_v10 = vmul.f32 %v3072_v59, %v3072_v59  ;;  %2405 = vtanh.f32 %v1140_v11  ;;  %v923_v38 = vmul.f32 %v3077_v8, %v3077_v8  ;;  %v3085_v58 = vadd.f32 %v3069_v53, %v680_v25 }
 0x156   : > { %v1048_v54 = vmul.f32 0.044715, %v984_v7  ;;  %v1648_v26 = vrot.slane %v1647_v55, 2  ;;  %v1392_v15 = vmul.f32 %v1328_v35, %v2917_v57  ;;  %v1393_v62 = vmul.f32 %v1329_v0, %v2959_v46 }
 0x157   : > { %v1662_v17 = vsel %vm1444_vm1, %v1429_v1, 0.0  ;;  %v951_v16 = vmul.f32 %v887_v10, %v3072_v59  ;;  %v987_v28 = vmul.f32 %v923_v38, %v3077_v8  ;;  %v885_v20 = vmul.f32 %v3085_v58, %v3085_v58  ;;  %2242 = vmatpush3.bf16.msra.mxu1 %v2334_v48 }
 0x158   : > { %v1112_v61 = vadd.f32 %v1048_v54, %v3055_v31  ;;  %v3099_v57 = vadd.f32 %v1657_v5, %v3044_v51  ;;  %v3101_v46 = vadd.f32 %v1488_v9, %v1487_v40  ;;  %v3103_v29 = vadd.f32 %v1509_v39, %v1508_v33  ;;  %v2197_v5 = vpop.f32.mrf.mxu0 }
 0x159   : > { %v1673_v32 = vrot.slane %v1672_v24, 4  ;;  %v2402_v27 = vpop.eup %2401  ;;  %v1661_v37 = vsel %vm1444_vm1, %v1428_v14, 0.0  ;;  %v1015_v52 = vmul.f32 0.044715, %v951_v16  ;;  %v1051_v34 = vmul.f32 0.044715, %v987_v28 }
 0x15a   : > { %v949_v4 = vmul.f32 %v885_v20, %v3085_v58  ;;  %v3107_v18 = vadd.f32 %v1648_v26, %v1647_v55  ;;  %v1499_v42 = vsel %vm1444_vm1, %v1392_v15, 0.0  ;;  %v1663_v23 = vadd.f32 %v1662_v17, %v1661_v37  ;;  %v693_v38 = vpop.f32.mrf.mxu0  ;;  %v2335_v17 = vld [vmem:[%s3614_s3 + $0x8] sm:$0xff]  }
 0x15b   : > { %v1176_v51 = vmul.f32 0.7978846, %v1112_v61  ;;  %v1500_v33 = vsel %vm1444_vm1, %v1393_v62, 0.0  ;;  %v1079_v40 = vadd.f32 %v1015_v52, %v3072_v59  ;;  %v1115_v12 = vadd.f32 %v1051_v34, %v3077_v8  ;;  %v837_v62 = vpop.f32.mrf.mxu1  ;;  %2243 = vmatprep.subr.bf16.mxu1 %v2335_v17 }
 0x15c   : > { %v1013_v35 = vmul.f32 0.044715, %v949_v4  ;;  %v1737_v49 = vpack.c.bf16 %v3101_v46, %v3101_v46  ;;  %v1511_v55 = vrot.slane %v3103_v29, 4  ;;  %v3119_v0 = vadd.f32 %v1673_v32, %v1672_v24  ;;  %v2336_v32 = vld [vmem:[%s3614_s3] sm:$0xff]   ;;  %2244 = vmatpush3.bf16.msra.mxu1 %v2335_v17 }
 0x15d   : > { %v1270_v1 = vadd.f32 1.0, %v2402_v27  ;;  %v1143_v14 = vmul.f32 0.7978846, %v1079_v40  ;;  %v1179_v11 = vmul.f32 0.7978846, %v1115_v12  ;;  %v3123_v9 = vadd.f32 %v3069_v53, %v824_v45  ;;  %v2198_v40 = vpop.f32.mrf.mxu0  ;;  %2245 = vmatprep.subr.bf16.mxu1 %v2336_v32 }
 0x15e   : > { %v2404_v25 = vpop.eup %2403  ;;  %v1077_v7 = vadd.f32 %v1013_v35, %v3085_v58  ;;  %v3125_v39 = vadd.f32 %v1500_v33, %v1499_v42  ;;  %v1664_v10 = vrot.slane %v1663_v23, 4  ;;  %2407 = vtanh.f32 %v1176_v51 }
 0x15f   : > { %v1306_v54 = vadd.f32 1.0, %v2404_v25  ;;  %2409 = vtanh.f32 %v1143_v14  ;;  %v921_v26 = vmul.f32 %v3123_v9, %v3123_v9  ;;  %v3130_v15 = vadd.f32 %v3069_v53, %v2197_v5 }
 0x160   : > { %v1141_v24 = vmul.f32 0.7978846, %v1077_v7  ;;  %v1675_v61 = vrot.slane %v3119_v0, 2  ;;  %v1334_v16 = vmul.f32 0.5, %v1270_v1  ;;  %2411 = vtanh.f32 %v1179_v11  ;;  %v2234_v11 = vpop.f32.mrf.mxu1  ;;  %2246 = vmatpush3.bf16.msra.mxu1 %v2336_v32 }
 0x161   : > { %v3137_v28 = vadd.f32 %v3069_v53, %v2233_v47  ;;  %v985_v20 = vmul.f32 %v921_v26, %v3123_v9  ;;  %v890_v45 = vmul.f32 %v3130_v15, %v3130_v15  ;;  %v3143_v63 = vadd.f32 %v3069_v53, %v693_v38 }
 0x162   : > { %2413 = vtanh.f32 %v1141_v24  ;;  %v2406_v27 = vpop.eup %2405  ;;  %v3148_v37 = vadd.f32 %v1664_v10, %v1663_v23  ;;  %v1370_v52 = vmul.f32 0.5, %v1306_v54  ;;  %v3153_v4 = vadd.f32 %v3069_v53, %v837_v62 }
 0x163   : > { %v926_v34 = vmul.f32 %v3137_v28, %v3137_v28  ;;  %v1268_v42 = vadd.f32 1.0, %v2406_v27  ;;  %v1049_v51 = vmul.f32 0.044715, %v985_v20  ;;  %v954_v5 = vmul.f32 %v890_v45, %v3130_v15  ;;  %v696_v27 = vpop.f32.mrf.mxu0 }
 0x164   : > { %v888_v33 = vmul.f32 %v3143_v63, %v3143_v63  ;;  %v1502_v23 = vrot.slane %v3125_v39, 4  ;;  %v1398_v12 = vmul.f32 %v1334_v16, %v2979_v56  ;;  %v924_v47 = vmul.f32 %v3153_v4, %v3153_v4 }
 0x165   : > { %v990_v35 = vmul.f32 %v926_v34, %v3137_v28  ;;  %v1332_v48 = vmul.f32 0.5, %v1268_v42  ;;  %v1113_v1 = vadd.f32 %v1049_v51, %v3123_v9  ;;  %v1018_v25 = vmul.f32 0.044715, %v954_v5 }
 0x166   : > { %v952_v14 = vmul.f32 %v888_v33, %v3143_v63  ;;  %v1666_v7 = vrot.slane %v3148_v37, 2  ;;  %v988_v54 = vmul.f32 %v924_v47, %v3153_v4  ;;  %v3168_v38 = vadd.f32 %v3069_v53, %v2198_v40 }
 0x167   : > { %v1054_v10 = vmul.f32 0.044715, %v990_v35  ;;  %v1434_v56 = vmul.f32 %v1370_v52, %v3004_v19  ;;  %v1177_v24 = vmul.f32 0.7978846, %v1113_v1  ;;  %v1082_v26 = vadd.f32 %v1018_v25, %v3130_v15 }
 0x168   : > { %v1016_v62 = vmul.f32 0.044715, %v952_v14  ;;  %v1052_v16 = vmul.f32 0.044715, %v988_v54  ;;  %v891_v20 = vmul.f32 %v3168_v38, %v3168_v38  ;;  %v3176_v45 = vadd.f32 %v3069_v53, %v2234_v11 }
 0x169   : > { %v1118_v17 = vadd.f32 %v1054_v10, %v3137_v28  ;;  %v1526_v34 = vsel %vm1444_vm1, %v1398_v12, 0.0  ;;  %v1396_v32 = vmul.f32 %v1332_v48, %v3035_v41  ;;  %2415 = vtanh.f32 %v1177_v24  ;;  %v840_v41 = vpop.f32.mrf.mxu1 }
 0x16a   : > { %v1146_v19 = vmul.f32 0.7978846, %v1082_v26  ;;  %v1080_v42 = vadd.f32 %v1016_v62, %v3143_v63  ;;  %v1116_v51 = vadd.f32 %v1052_v16, %v3153_v4  ;;  %v955_v5 = vmul.f32 %v891_v20, %v3168_v38  ;;  %v2201_v16 = vpop.f32.mrf.mxu0 }
 0x16b   : > { %v1182_v52 = vmul.f32 0.7978846, %v1118_v17  ;;  %v2408_v33 = vpop.eup %2407  ;;  %v1688_v40 = vsel %vm1444_vm1, %v1434_v56, 0.0  ;;  %v927_v35 = vmul.f32 %v3176_v45, %v3176_v45  ;;  %v3187_v12 = vadd.f32 %v3069_v53, %v696_v27 }
 0x16c   : > { %2417 = vtanh.f32 %v1146_v19  ;;  %v2410_v47 = vpop.eup %2409  ;;  %v1144_v48 = vmul.f32 0.7978846, %v1080_v42  ;;  %v1180_v1 = vmul.f32 0.7978846, %v1116_v51  ;;  %v1019_v25 = vmul.f32 0.044715, %v955_v5 }
 0x16d   : > { %2419 = vtanh.f32 %v1182_v52  ;;  %v2412_v14 = vpop.eup %2411  ;;  %v1517_v11 = vsel %vm1444_vm1, %v1396_v32, 0.0  ;;  %v1271_v10 = vadd.f32 1.0, %v2410_v47  ;;  %v991_v54 = vmul.f32 %v927_v35, %v3176_v45 }
 0x16e   : > { %v889_v56 = vmul.f32 %v3187_v12, %v3187_v12  ;;  %v1307_v26 = vadd.f32 1.0, %v2412_v14  ;;  %2421 = vtanh.f32 %v1144_v48  ;;  %v1083_v62 = vadd.f32 %v1019_v25, %v3168_v38 }
 0x16f   : > { %v2414_v24 = vpop.eup %2413  ;;  %v3195_v17 = vadd.f32 %v3069_v53, %v840_v41  ;;  %v1304_v20 = vadd.f32 1.0, %v2408_v33  ;;  %v1335_v27 = vmul.f32 0.5, %v1271_v10  ;;  %2423 = vtanh.f32 %v1180_v1 }
 0x170   : > { %v1269_v19 = vadd.f32 1.0, %v2414_v24  ;;  %v1371_v32 = vmul.f32 0.5, %v1307_v26  ;;  %v1147_v52 = vmul.f32 0.7978846, %v1083_v62  ;;  %v1055_v42 = vmul.f32 0.044715, %v991_v54 }
 0x171   : > { %v953_v51 = vmul.f32 %v889_v56, %v3187_v12  ;;  %v1399_v5 = vmul.f32 %v1335_v27, %v3072_v59  ;;  %v925_v47 = vmul.f32 %v3195_v17, %v3195_v17  ;;  %v3202_v48 = vadd.f32 %v3069_v53, %v2201_v16 }
 0x172   : > { %v1333_v35 = vmul.f32 0.5, %v1269_v19  ;;  %v1435_v41 = vmul.f32 %v1371_v32, %v3077_v8  ;;  %2425 = vtanh.f32 %v1147_v52  ;;  %v1119_v33 = vadd.f32 %v1055_v42, %v3176_v45 }
 0x173   : > { %v1017_v1 = vmul.f32 0.044715, %v953_v51  ;;  %v1368_v25 = vmul.f32 0.5, %v1304_v20  ;;  %v1527_v14 = vsel %vm1444_vm1, %v1399_v5, 0.0  ;;  %v989_v59 = vmul.f32 %v925_v47, %v3195_v17 }
 0x174   : > { %v1397_v10 = vmul.f32 %v1333_v35, %v3085_v58  ;;  %v1528_v54 = vadd.f32 %v1527_v14, %v1526_v34  ;;  %v1689_v56 = vsel %vm1444_vm1, %v1435_v41, 0.0  ;;  %v1183_v24 = vmul.f32 0.7978846, %v1119_v33 }
 0x175   : > { %v1081_v26 = vadd.f32 %v1017_v1, %v3187_v12  ;;  %v1690_v62 = vadd.f32 %v1689_v56, %v1688_v40  ;;  %v1053_v16 = vmul.f32 0.044715, %v989_v59  ;;  %v894_v27 = vmul.f32 %v3202_v48, %v3202_v48 }
 0x176   : > { %v1518_v8 = vsel %vm1444_vm1, %v1397_v10, 0.0  ;;  %v2416_v20 = vpop.eup %2415  ;;  %v1529_v19 = vrot.slane %v1528_v54, 4  ;;  %2427 = vtanh.f32 %v1183_v24  ;;  %v1512_v34 = vadd.f32 %v1511_v55, %v3103_v29 }
 0x177   : > { %v1519_v32 = vadd.f32 %v1518_v8, %v1517_v11  ;;  %v1145_v58 = vmul.f32 0.7978846, %v1081_v26  ;;  %v1691_v52 = vrot.slane %v1690_v62, 4  ;;  %v1305_v42 = vadd.f32 1.0, %v2416_v20 }
 0x178   : > { %v1117_v51 = vadd.f32 %v1053_v16, %v3195_v17  ;;  %v1676_v5 = vadd.f32 %v1675_v61, %v3119_v0  ;;  %v1530_v35 = vadd.f32 %v1529_v19, %v1528_v54  ;;  %v1503_v11 = vadd.f32 %v1502_v23, %v3125_v39 }
 0x179   : > { %v2418_v40 = vpop.eup %2417  ;;  %v1520_v47 = vrot.slane %v1519_v32, 4  ;;  %2429 = vtanh.f32 %v1145_v58  ;;  %v1369_v33 = vmul.f32 0.5, %v1305_v42  ;;  %v1667_v55 = vadd.f32 %v1666_v7, %v3148_v37 }
 0x17a   : > { %v2420_v41 = vpop.eup %2419  ;;  %v1274_v1 = vadd.f32 1.0, %v2418_v40  ;;  %v1181_v29 = vmul.f32 0.7978846, %v1117_v51  ;;  %v1432_v14 = vmul.f32 %v1368_v25, %v3055_v31  ;;  %v958_v0 = vmul.f32 %v894_v27, %v3202_v48 }
 0x17b   : > { %v1521_v10 = vadd.f32 %v1520_v47, %v1519_v32  ;;  %v2422_v61 = vpop.eup %2421  ;;  %v1531_v59 = vrot.slane %v1530_v35, 2  ;;  %v1692_v54 = vadd.f32 %v1691_v52, %v1690_v62  ;;  %v1433_v56 = vmul.f32 %v1369_v33, %v3123_v9  ;;  %v709_v52 = vpop.f32.mrf.mxu0 }
 0x17c   : > { %2431 = vtanh.f32 %v1181_v29  ;;  %v2424_v24 = vpop.eup %2423  ;;  %v3233_v39 = vadd.f32 %v1497_v43, %v3037_v50  ;;  %v1513_v23 = vrot.slane %v1512_v34, 2  ;;  %v1338_v26 = vmul.f32 0.5, %v1274_v1  ;;  %v2237_v50 = vpop.f32.mrf.mxu1 }
 0x17d   : > { %v1310_v37 = vadd.f32 1.0, %v2420_v41  ;;  %v3239_v7 = vunpack.c.l.b16 %v1737_v49  ;;  %v1680_v9 = vsel %vm1444_vm1, %v1433_v56, 0.0  ;;  %v1677_v62 = vrot.slane %v1676_v5, 1  ;;  %v3262_v56 = vpop.f32.mrf.mxu0 }
 0x17e   : > { %v1504_v8 = vrot.slane %v1503_v11, 2  ;;  %v1522_v16 = vrot.slane %v1521_v10, 2  ;;  %v1022_v27 = vmul.f32 0.044715, %v958_v0  ;;  %v1668_v20 = vrot.slane %v1667_v55, 1 }
 0x17f   : > { %v2426_v43 = vpop.eup %2425  ;;  %v1679_v19 = vsel %vm1444_vm1, %v1432_v14, 0.0  ;;  %v3244_v32 = vadd.f32 %v1531_v59, %v1530_v35  ;;  %v1693_v58 = vrot.slane %v1692_v54, 2  ;;  %v3246_v46 = vadd.f32 %v1513_v23, %v1512_v34 }
 0x180   : > { %v1681_v49 = vadd.f32 %v1680_v9, %v1679_v19  ;;  %v1402_v42 = vmul.f32 %v1338_v26, %v3130_v15  ;;  %v1374_v51 = vmul.f32 0.5, %v1310_v37  ;;  %v1272_v40 = vadd.f32 1.0, %v2422_v61  ;;  %v853_v26 = vpop.f32.mrf.mxu1  ;;  %v3277_v19 = vpop.f32.mrf.mxu0 }
 0x181   : > { %v1308_v47 = vadd.f32 1.0, %v2424_v24  ;;  %v1275_v41 = vadd.f32 1.0, %v2426_v43  ;;  %v3250_v33 = vadd.f32 %v3069_v53, %v2237_v50  ;;  %v3252_v1 = vadd.f32 %v1677_v62, %v1676_v5 }
 0x182   : > { %v3254_v29 = vadd.f32 %v1504_v8, %v1503_v11  ;;  %v1523_v35 = vadd.f32 %v1522_v16, %v1521_v10  ;;  %v1086_v14 = vadd.f32 %v1022_v27, %v3202_v48  ;;  %v3257_v34 = vadd.f32 %v1668_v20, %v1667_v55 }
 0x183   : > { %v2428_v0 = vpop.eup %2427  ;;  %v1533_v59 = vrot.slane %v3244_v32, 1  ;;  %v3260_v15 = vadd.f32 %v1693_v58, %v1692_v54  ;;  %v1339_v61 = vmul.f32 0.5, %v1275_v41  ;;  %v1682_v24 = vrot.slane %v1681_v49, 4 }
 0x184   : > { %v1544_v23 = vsel %vm1444_vm1, %v1402_v42, 0.0  ;;  %v1438_v5 = vmul.f32 %v1374_v51, %v3137_v28  ;;  %v1311_v11 = vadd.f32 1.0, %v2428_v0  ;;  %v1336_v37 = vmul.f32 0.5, %v1272_v40 }
 0x185   : > { %v1372_v9 = vmul.f32 0.5, %v1308_v47  ;;  %v1403_v55 = vmul.f32 %v1339_v61, %v3168_v38  ;;  %v930_v62 = vmul.f32 %v3250_v33, %v3250_v33  ;;  %v1524_v54 = vrot.slane %v1523_v35, 1 }
 0x186   : > { %v2430_v10 = vpop.eup %2429  ;;  %v1375_v8 = vmul.f32 0.5, %v1311_v11  ;;  %v1150_v27 = vmul.f32 0.7978846, %v1086_v14  ;;  %v3272_v28 = vadd.f32 %v3069_v53, %v709_v52  ;;  %v3275_v20 = vadd.f32 %v3069_v53, %v853_v26 }
 0x187   : > { %v1273_v16 = vadd.f32 1.0, %v2430_v10  ;;  %v1545_v50 = vsel %vm1444_vm1, %v1403_v55, 0.0  ;;  %v994_v43 = vmul.f32 %v930_v62, %v3250_v33  ;;  %v1683_v58 = vadd.f32 %v1682_v24, %v1681_v49 }
 0x188   : > { %v1546_v42 = vadd.f32 %v1545_v50, %v1544_v23  ;;  %v1439_v51 = vmul.f32 %v1375_v8, %v3176_v45  ;;  %v892_v14 = vmul.f32 %v3272_v28, %v3272_v28  ;;  %v928_v52 = vmul.f32 %v3275_v20, %v3275_v20  ;;  %v3289_v23 = vpop.f32.mrf.mxu0 }
 0x189   : > { %v2432_v38 = vpop.eup %2431  ;;  %v1337_v40 = vmul.f32 0.5, %v1273_v16  ;;  %v1058_v41 = vmul.f32 0.044715, %v994_v43  ;;  %v1706_v0 = vsel %vm1444_vm1, %v1438_v5, 0.0  ;;  %2433 = vtanh.f32 %v1150_v27 }
 0x18a   : > { %v1309_v47 = vadd.f32 1.0, %v2432_v38  ;;  %v1547_v61 = vrot.slane %v1546_v42, 4  ;;  %v1707_v11 = vsel %vm1444_vm1, %v1439_v51, 0.0  ;;  %v956_v24 = vmul.f32 %v892_v14, %v3272_v28 }
 0x18b   : > { %v1401_v26 = vmul.f32 %v1337_v40, %v3187_v12  ;;  %v1122_v45 = vadd.f32 %v1058_v41, %v3250_v33  ;;  %v1684_v10 = vrot.slane %v1683_v58, 2  ;;  %v1400_v55 = vmul.f32 %v1336_v37, %v3143_v63  ;;  %v2238_v41 = vpop.f32.mrf.mxu1 }
 0x18c   : > { %v1373_v49 = vmul.f32 0.5, %v1309_v47  ;;  %v1708_v62 = vadd.f32 %v1707_v11, %v1706_v0  ;;  %v992_v8 = vmul.f32 %v928_v52, %v3275_v20  ;;  %v1758_v5 = vpack.c.bf16 %v3252_v1, %v3252_v1  ;;  %v3302_v1 = vpop.f32.mrf.mxu0 }
 0x18d   : > { %v1757_v12 = vpack.c.bf16 %v3257_v34, %v3257_v34  ;;  %v1548_v16 = vadd.f32 %v1547_v61, %v1546_v42  ;;  %v1186_v27 = vmul.f32 0.7978846, %v1122_v45  ;;  %v1534_v50 = vadd.f32 %v1533_v59, %v3244_v32 }
 0x18e   : > { %v1695_v43 = vrot.slane %v3260_v15, 1  ;;  %v1536_v38 = vsel %vm1444_vm1, %v1401_v26, 0.0  ;;  %v1020_v51 = vmul.f32 0.044715, %v956_v24  ;;  %v1525_v40 = vadd.f32 %v1524_v54, %v1523_v35  ;;  %v2206_v26 = vpop.f32.mrf.mxu0 }
 0x18f   : > { %v1436_v63 = vmul.f32 %v1372_v9, %v3153_v4  ;;  %v1437_v37 = vmul.f32 %v1373_v49, %v3195_v17  ;;  %v1056_v47 = vmul.f32 0.044715, %v992_v8  ;;  %v1685_v14 = vadd.f32 %v1684_v10, %v1683_v58 }
 0x190   : > { %v1535_v34 = vsel %vm1444_vm1, %v1400_v55, 0.0  ;;  %v1709_v42 = vrot.slane %v1708_v62, 4  ;;  %2435 = vtanh.f32 %v1186_v27  ;;  %v1549_v32 = vrot.slane %v1548_v16, 2 }
 0x191   : > { %v1537_v59 = vadd.f32 %v1536_v38, %v1535_v34  ;;  %v1084_v52 = vadd.f32 %v1020_v51, %v3272_v28  ;;  %v3308_v35 = vadd.f32 %v3069_v53, %v3262_v56  ;;  %v3310_v4 = vunpack.c.l.b16 %v1758_v5 }
 0x192   : > { %v3314_v9 = vadd.f32 %v1695_v43, %v3260_v15  ;;  %v3317_v54 = vadd.f32 %v3069_v53, %v2238_v41  ;;  %v1742_v58 = vpack.c.bf16 %v1534_v50, %v1534_v50  ;;  %v1741_v0 = vpack.c.bf16 %v1525_v40, %v1525_v40  ;;  %v728_v40 = vpop.f32.mrf.mxu0 }
 0x193   : > { %v1698_v61 = vsel %vm1444_vm1, %v1437_v37, 0.0  ;;  %v1120_v11 = vadd.f32 %v1056_v47, %v3275_v20  ;;  %v3321_v49 = vunpack.c.l.b16 %v1757_v12  ;;  %v1686_v56 = vrot.slane %v1685_v14, 1 }
 0x194   : > { %v1710_v45 = vadd.f32 %v1709_v42, %v1708_v62  ;;  %v895_v24 = vmul.f32 %v3308_v35, %v3308_v35  ;;  %v1697_v15 = vsel %vm1444_vm1, %v1436_v63, 0.0  ;;  %v1550_v10 = vadd.f32 %v1549_v32, %v1548_v16  ;;  %v856_v16 = vpop.f32.mrf.mxu1 }
 0x195   : > { %v1538_v55 = vrot.slane %v1537_v59, 4  ;;  %v1148_v8 = vmul.f32 0.7978846, %v1084_v52  ;;  %v1699_v27 = vadd.f32 %v1698_v61, %v1697_v15  ;;  %v931_v12 = vmul.f32 %v3317_v54, %v3317_v54 }
 0x196   : > { %v959_v50 = vmul.f32 %v895_v24, %v3308_v35  ;;  %v3331_v43 = vunpack.c.l.b16 %v1742_v58  ;;  %v3333_v62 = vunpack.c.l.b16 %v1741_v0  ;;  %v1184_v38 = vmul.f32 0.7978846, %v1120_v11  ;;  %v2434_v63 = vpop.eup %2433 }
 0x197   : > { %v3337_v51 = vadd.f32 %v3069_v53, %v3277_v19  ;;  %v3339_v37 = vadd.f32 %v1686_v56, %v1685_v14  ;;  %v1711_v47 = vrot.slane %v1710_v45, 2  ;;  %v995_v34 = vmul.f32 %v931_v12, %v3317_v54 }
 0x198   : > { %v1023_v41 = vmul.f32 0.044715, %v959_v50  ;;  %v1551_v42 = vrot.slane %v1550_v10, 1  ;;  %v1539_v32 = vadd.f32 %v1538_v55, %v1537_v59  ;;  %2437 = vtanh.f32 %v1148_v8  ;;  %v2209_v59 = vpop.f32.mrf.mxu0 }
 0x199   : > { %v893_v52 = vmul.f32 %v3337_v51, %v3337_v51  ;;  %v1700_v58 = vrot.slane %v1699_v27, 4  ;;  %v1059_v19 = vmul.f32 0.044715, %v995_v34  ;;  %v3346_v61 = vadd.f32 %v3069_v53, %v856_v16 }
 0x19a   : > { %v1087_v0 = vadd.f32 %v1023_v41, %v3308_v35  ;;  %v1278_v11 = vadd.f32 1.0, %v2434_v63  ;;  %2439 = vtanh.f32 %v1184_v38  ;;  %v3351_v56 = vadd.f32 %v3069_v53, %v3289_v23 }
 0x19b   : > { %v957_v14 = vmul.f32 %v893_v52, %v3337_v51  ;;  %v3353_v24 = vadd.f32 %v1711_v47, %v1710_v45  ;;  %v1123_v55 = vadd.f32 %v1059_v19, %v3317_v54  ;;  %v929_v8 = vmul.f32 %v3346_v61, %v3346_v61 }
 0x19c   : > { %v1151_v15 = vmul.f32 0.7978846, %v1087_v0  ;;  %v3358_v12 = vadd.f32 %v1551_v42, %v1550_v10  ;;  %v1540_v16 = vrot.slane %v1539_v32, 2  ;;  %v898_v63 = vmul.f32 %v3351_v56, %v3351_v56  ;;  %v741_v10 = vpop.f32.mrf.mxu0 }
 0x19d   : > { %v2436_v50 = vpop.eup %2435  ;;  %v1021_v38 = vmul.f32 0.044715, %v957_v14  ;;  %v1701_v41 = vadd.f32 %v1700_v58, %v1699_v27  ;;  %v1187_v23 = vmul.f32 0.7978846, %v1123_v55  ;;  %v993_v45 = vmul.f32 %v929_v8, %v3346_v61 }
 0x19e   : > { %2441 = vtanh.f32 %v1151_v15  ;;  %v1342_v47 = vmul.f32 0.5, %v1278_v11  ;;  %v962_v52 = vmul.f32 %v898_v63, %v3351_v56  ;;  %v3367_v0 = vadd.f32 %v3069_v53, %v3302_v1 }
 0x19f   : > { %v1085_v34 = vadd.f32 %v1021_v38, %v3337_v51  ;;  %v1314_v42 = vadd.f32 1.0, %v2436_v50  ;;  %2443 = vtanh.f32 %v1187_v23  ;;  %v1057_v19 = vmul.f32 0.044715, %v993_v45  ;;  %v2210_v38 = vpop.f32.mrf.mxu0 }
 0x1a0   : > { %v3370_v14 = vadd.f32 %v3069_v53, %v2206_v26  ;;  %v3372_v27 = vadd.f32 %v1540_v16, %v1539_v32  ;;  %v1026_v15 = vmul.f32 0.044715, %v962_v52  ;;  %v896_v11 = vmul.f32 %v3367_v0, %v3367_v0 }
 0x1a1   : > { %v1149_v58 = vmul.f32 0.7978846, %v1085_v34  ;;  %v1702_v55 = vrot.slane %v1701_v41, 2  ;;  %v1121_v8 = vadd.f32 %v1057_v19, %v3346_v61  ;;  %v3380_v50 = vadd.f32 %v3069_v53, %v728_v40 }
 0x1a2   : > { %v899_v1 = vmul.f32 %v3370_v14, %v3370_v14  ;;  %v1406_v32 = vmul.f32 %v1342_v47, %v3202_v48  ;;  %v1090_v16 = vadd.f32 %v1026_v15, %v3351_v56  ;;  %v1378_v63 = vmul.f32 0.5, %v1314_v42 }
 0x1a3   : > { %2445 = vtanh.f32 %v1149_v58  ;;  %v1185_v23 = vmul.f32 0.7978846, %v1121_v8  ;;  %v960_v45 = vmul.f32 %v896_v11, %v3367_v0  ;;  %v897_v40 = vmul.f32 %v3380_v50, %v3380_v50 }
 0x1a4   : > { %v963_v34 = vmul.f32 %v899_v1, %v3370_v14  ;;  %v1154_v19 = vmul.f32 0.7978846, %v1090_v16  ;;  %v3392_v5 = vadd.f32 %v3069_v53, %v2209_v59  ;;  %v3394_v47 = vadd.f32 %v1702_v55, %v1701_v41  ;;  %v744_v1 = vpop.f32.mrf.mxu0 }
 0x1a5   : > { %v2438_v48 = vpop.eup %2437  ;;  %2447 = vtanh.f32 %v1185_v23  ;;  %v1024_v58 = vmul.f32 0.044715, %v960_v45  ;;  %v1562_v15 = vsel %vm1444_vm1, %v1406_v32, 0.0  ;;  %v961_v11 = vmul.f32 %v897_v40, %v3380_v50 }
 0x1a6   : > { %v1027_v42 = vmul.f32 0.044715, %v963_v34  ;;  %2449 = vtanh.f32 %v1154_v19  ;;  %v902_v8 = vmul.f32 %v3392_v5, %v3392_v5  ;;  %v1442_v25 = vmul.f32 %v1378_v63, %v3250_v33 }
 0x1a7   : > { %v2440_v16 = vpop.eup %2439  ;;  %v1088_v59 = vadd.f32 %v1024_v58, %v3367_v0  ;;  %v3404_v55 = vadd.f32 %v3069_v53, %v741_v10  ;;  %v1276_v23 = vadd.f32 1.0, %v2438_v48  ;;  %v1025_v45 = vmul.f32 0.044715, %v961_v11 }
 0x1a8   : > { %v1091_v41 = vadd.f32 %v1027_v42, %v3370_v14  ;;  %v966_v32 = vmul.f32 %v902_v8, %v3392_v5  ;;  %v3408_v34 = vadd.f32 %v3069_v53, %v2210_v38  ;;  %v3413_v33 = vadd.f32 %v3069_v53, %v744_v1 }
 0x1a9   : > { %v1152_v19 = vmul.f32 0.7978846, %v1088_v59  ;;  %v900_v31 = vmul.f32 %v3404_v55, %v3404_v55  ;;  %v1312_v58 = vadd.f32 1.0, %v2440_v16  ;;  %v1089_v10 = vadd.f32 %v1025_v45, %v3380_v50 }
 0x1aa   : > { %v1155_v40 = vmul.f32 0.7978846, %v1091_v41  ;;  %v1030_v42 = vmul.f32 0.044715, %v966_v32  ;;  %v903_v48 = vmul.f32 %v3408_v34, %v3408_v34  ;;  %v901_v8 = vmul.f32 %v3413_v33, %v3413_v33 }
 0x1ab   : > { %v2442_v63 = vpop.eup %2441  ;;  %2451 = vtanh.f32 %v1152_v19  ;;  %v964_v38 = vmul.f32 %v900_v31, %v3404_v55  ;;  %v1153_v41 = vmul.f32 0.7978846, %v1089_v10  ;;  %v1340_v21 = vmul.f32 0.5, %v1276_v23 }
 0x1ac   : > { %v1279_v11 = vadd.f32 1.0, %v2442_v63  ;;  %v2444_v59 = vpop.eup %2443  ;;  %2453 = vtanh.f32 %v1155_v40  ;;  %v1094_v53 = vadd.f32 %v1030_v42, %v3392_v5  ;;  %v967_v1 = vmul.f32 %v903_v48, %v3408_v34 }
 0x1ad   : > { %v1315_v45 = vadd.f32 1.0, %v2444_v59  ;;  %v1028_v32 = vmul.f32 0.044715, %v964_v38  ;;  %v965_v2 = vmul.f32 %v901_v8, %v3413_v33  ;;  %2455 = vtanh.f32 %v1153_v41 }
 0x1ae   : > { %v1343_v16 = vmul.f32 0.5, %v1279_v11  ;;  %v1158_v19 = vmul.f32 0.7978846, %v1094_v53  ;;  %v1031_v63 = vmul.f32 0.044715, %v967_v1  ;;  %v1376_v52 = vmul.f32 0.5, %v1312_v58 }
 0x1af   : > { %v1379_v26 = vmul.f32 0.5, %v1315_v45  ;;  %v1092_v40 = vadd.f32 %v1028_v32, %v3404_v55  ;;  %v1029_v10 = vmul.f32 0.044715, %v965_v2  ;;  %v1404_v41 = vmul.f32 %v1340_v21, %v3272_v28 }
 0x1b0   : > { %v2446_v31 = vpop.eup %2445  ;;  %v1407_v17 = vmul.f32 %v1343_v16, %v3308_v35  ;;  %2457 = vtanh.f32 %v1158_v19  ;;  %v1095_v48 = vadd.f32 %v1031_v63, %v3408_v34  ;;  %v1724_v63 = vsel %vm1444_vm1, %v1442_v25, 0.0 }
 0x1b1   : > { %v1277_v42 = vadd.f32 1.0, %v2446_v31  ;;  %v1443_v38 = vmul.f32 %v1379_v26, %v3317_v54  ;;  %v1156_v23 = vmul.f32 0.7978846, %v1092_v40  ;;  %v1093_v8 = vadd.f32 %v1029_v10, %v3413_v33 }
 0x1b2   : > { %v1563_v11 = vsel %vm1444_vm1, %v1407_v17, 0.0  ;;  %v2448_v59 = vpop.eup %2447  ;;  %v1159_v1 = vmul.f32 0.7978846, %v1095_v48  ;;  %v3619_v17 = vrot.slane %v3372_v27, 1  ;;  %v1440_v21 = vmul.f32 %v1376_v52, %v3275_v20 }
 0x1b3   : > { %v1564_v35 = vadd.f32 %v1563_v11, %v1562_v15  ;;  %v1341_v53 = vmul.f32 0.5, %v1277_v42  ;;  %v2450_v16 = vpop.eup %2449  ;;  %v1725_v2 = vsel %vm1444_vm1, %v1443_v38, 0.0  ;;  %v1313_v58 = vadd.f32 1.0, %v2448_v59 }
 0x1b4   : > { %2459 = vtanh.f32 %v1156_v23  ;;  %v1157_v45 = vmul.f32 0.7978846, %v1093_v8  ;;  %v1543_v32 = vadd.f32 %v3619_v17, %v3372_v27  ;;  %v1282_v19 = vadd.f32 1.0, %v2450_v16 }
 0x1b5   : > { %v1565_v54 = vrot.slane %v1564_v35, 4  ;;  %v1405_v26 = vmul.f32 %v1341_v53, %v3337_v51  ;;  %v1377_v28 = vmul.f32 0.5, %v1313_v58  ;;  %2461 = vtanh.f32 %v1159_v1 }
 0x1b6   : > { %v1553_v15 = vsel %vm1444_vm1, %v1404_v41, 0.0  ;;  %v1726_v40 = vadd.f32 %v1725_v2, %v1724_v63  ;;  %v1759_v42 = vpack.c.bf16 %v3339_v37, %v3339_v37  ;;  %2463 = vtanh.f32 %v1157_v45 }
 0x1b7   : > { %v1566_v31 = vadd.f32 %v1565_v54, %v1564_v35  ;;  %v1554_v10 = vsel %vm1444_vm1, %v1405_v26, 0.0  ;;  %v1441_v48 = vmul.f32 %v1377_v28, %v3346_v61  ;;  %v1713_v25 = vrot.slane %v3353_v24, 1 }
 0x1b8   : > { %v1555_v27 = vadd.f32 %v1554_v10, %v1553_v15  ;;  %v2452_v51 = vpop.eup %2451  ;;  %v1743_v11 = vpack.c.bf16 %v1543_v32, %v1543_v32  ;;  %v1704_v20 = vrot.slane %v3394_v47, 1  ;;  %v1346_v52 = vmul.f32 0.5, %v1282_v19 }
 0x1b9   : > { %v2454_v38 = vpop.eup %2453  ;;  %v1716_v8 = vsel %vm1444_vm1, %v1441_v48, 0.0  ;;  %v1280_v59 = vadd.f32 1.0, %v2452_v51  ;;  %v1515_v41 = vrot.slane %v3246_v46, 1  ;;  %v3620_v35 = vpack.c.bf16 %v3358_v12, %v3358_v12 }
 0x1ba   : > { %v1556_v23 = vrot.slane %v1555_v27, 4  ;;  %v1715_v61 = vsel %vm1444_vm1, %v1440_v21, 0.0  ;;  %v1567_v1 = vrot.slane %v1566_v31, 2  ;;  %v1727_v16 = vrot.slane %v1726_v40, 4  ;;  %v2456_v2 = vpop.eup %2455 }
 0x1bb   : > { %v3450_v53 = vunpack.c.l.b16 %v3620_v35  ;;  %v1717_v45 = vadd.f32 %v1716_v8, %v1715_v61  ;;  %v1344_v17 = vmul.f32 0.5, %v1280_v59  ;;  %v1283_v32 = vadd.f32 1.0, %v2454_v38 }
 0x1bc   : > { %v1557_v58 = vadd.f32 %v1556_v23, %v1555_v27  ;;  %v3454_v54 = vadd.f32 %v1704_v20, %v3394_v47  ;;  %v1410_v26 = vmul.f32 %v1346_v52, %v3351_v56  ;;  %v1281_v19 = vadd.f32 1.0, %v2456_v2 }
 0x1bd   : > { %v3621_v12 = vrot.slane %v3254_v29, 1  ;;  %v2458_v28 = vpop.eup %2457  ;;  %v3460_v21 = vunpack.c.l.b16 %v1743_v11  ;;  %v1347_v10 = vmul.f32 0.5, %v1283_v32  ;;  %v3463_v27 = vadd.f32 %v1515_v41, %v3246_v46 }
 0x1be   : > { %v1558_v15 = vrot.slane %v1557_v58, 2  ;;  %v1568_v48 = vadd.f32 %v1567_v1, %v1566_v31  ;;  %v1728_v51 = vadd.f32 %v1727_v16, %v1726_v40  ;;  %v1408_v47 = vmul.f32 %v1344_v17, %v3367_v0 }
 0x1bf   : > { %v1507_v63 = vadd.f32 %v3621_v12, %v3254_v29  ;;  %v1345_v20 = vmul.f32 0.5, %v1281_v19  ;;  %v1718_v52 = vrot.slane %v1717_v45, 4  ;;  %v1411_v38 = vmul.f32 %v1347_v10, %v3370_v14 }
 0x1c0   : > { %v1559_v56 = vadd.f32 %v1558_v15, %v1557_v58  ;;  %v1286_v23 = vadd.f32 1.0, %v2458_v28  ;;  %v1580_v11 = vsel %vm1444_vm1, %v1410_v26, 0.0  ;;  %v1738_v46 = vpack.c.bf16 %v3233_v39, %v3233_v39 }
 0x1c1   : > { %v2460_v29 = vpop.eup %2459  ;;  %v1409_v8 = vmul.f32 %v1345_v20, %v3380_v50  ;;  %v1739_v59 = vpack.c.bf16 %v1507_v63, %v1507_v63  ;;  %v1581_v31 = vsel %vm1444_vm1, %v1411_v38, 0.0  ;;  %v1571_v61 = vsel %vm1444_vm1, %v1408_v47, 0.0 }
 0x1c2   : > { %v1560_v41 = vrot.slane %v1559_v56, 1  ;;  %v1350_v40 = vmul.f32 0.5, %v1286_v23  ;;  %v1284_v0 = vadd.f32 1.0, %v2460_v29  ;;  %v2462_v35 = vpop.eup %2461  ;;  %v1582_v1 = vadd.f32 %v1581_v31, %v1580_v11 }
 0x1c3   : > { %v1572_v14 = vsel %vm1444_vm1, %v1409_v8, 0.0  ;;  %v1740_v16 = vpack.c.bf16 %v3463_v27, %v3463_v27  ;;  %v1569_v2 = vrot.slane %v1568_v48, 1  ;;  %v1729_v50 = vrot.slane %v1728_v51, 2  ;;  %v2464_v39 = vpop.eup %2463 }
 0x1c4   : > { %v1719_v58 = vadd.f32 %v1718_v52, %v1717_v45  ;;  %v1573_v17 = vadd.f32 %v1572_v14, %v1571_v61  ;;  %v1583_v32 = vrot.slane %v1582_v1, 4  ;;  %v1348_v26 = vmul.f32 0.5, %v1284_v0 }
 0x1c5   : > { %v1287_v19 = vadd.f32 1.0, %v2462_v35  ;;  %v1817_v12 = vunpack.c.l.b16 %v1738_v46  ;;  %v1561_v63 = vadd.f32 %v1560_v41, %v1559_v56  ;;  %v1414_v15 = vmul.f32 %v1350_v40, %v3392_v5 }
 0x1c6   : > { %v1574_v28 = vrot.slane %v1573_v17, 4  ;;  %v1818_v10 = vunpack.c.l.b16 %v1739_v59  ;;  %v1584_v47 = vadd.f32 %v1583_v32, %v1582_v1  ;;  %v1285_v38 = vadd.f32 1.0, %v2464_v39 }
 0x1c7   : > { %v1351_v20 = vmul.f32 0.5, %v1287_v19  ;;  %v1845_v23 = vsel %vm1844_vm2, %v3011_v22, %v3021_v30  ;;  %v1570_v29 = vadd.f32 %v1569_v2, %v1568_v48  ;;  %v3480_v45 = vadd.f32 %v1729_v50, %v1728_v51 }
 0x1c8   : > { %v1720_v52 = vrot.slane %v1719_v58, 2  ;;  %v1575_v11 = vadd.f32 %v1574_v28, %v1573_v17  ;;  %v1585_v8 = vrot.slane %v1584_v47, 2  ;;  %v1412_v46 = vmul.f32 %v1348_v26, %v3404_v55 }
 0x1c9   : > { %v1415_v56 = vmul.f32 %v1351_v20, %v3408_v34  ;;  %v1349_v41 = vmul.f32 0.5, %v1285_v38  ;;  %v1745_v5 = vpack.c.bf16 %v1561_v63, %v1561_v63  ;;  %v1598_v31 = vsel %vm1444_vm1, %v1414_v15, 0.0 }
 0x1ca   : > { %v1576_v59 = vrot.slane %v1575_v11, 2  ;;  %v1847_v40 = vsel %vm1846_vm3, %v3041_v6, %v1845_v23  ;;  %v1586_v0 = vadd.f32 %v1585_v8, %v1584_v47  ;;  %v1746_v35 = vpack.c.bf16 %v1570_v29, %v1570_v29 }
 0x1cb   : > { %v1599_v22 = vsel %vm1444_vm1, %v1415_v56, 0.0  ;;  %v1413_v30 = vmul.f32 %v1349_v41, %v3413_v33  ;;  %v1721_v55 = vadd.f32 %v1720_v52, %v1719_v58  ;;  %v1589_v34 = vsel %vm1444_vm1, %v1412_v46, 0.0 }
 0x1cc   : > { %v1577_v48 = vadd.f32 %v1576_v59, %v1575_v11  ;;  %v1600_v51 = vadd.f32 %v1599_v22, %v1598_v31  ;;  %v1587_v1 = vrot.slane %v1586_v0, 1  ;;  %v1849_v6 = vsel %vm1848_vm4, %v3029_v36, %v1847_v40 }
 0x1cd   : > { %v1590_v61 = vsel %vm1444_vm1, %v1413_v30, 0.0  ;;  %v1824_v17 = vunpack.c.l.b16 %v1745_v5  ;;  %v1851_v33 = vsel %vm1850_vm5, %v3239_v7, %v1849_v6  ;;  %v1858_v19 = vsel %vm1844_vm2, %v3331_v43, %v3333_v62 }
 0x1ce   : > { %v1578_v14 = vrot.slane %v1577_v48, 1  ;;  %v1601_v2 = vrot.slane %v1600_v51, 4  ;;  %v1591_v50 = vadd.f32 %v1590_v61, %v1589_v34  ;;  %v1588_v39 = vadd.f32 %v1587_v1, %v1586_v0 }
 0x1cf   : > { %v1722_v63 = vrot.slane %v1721_v55, 1  ;;  %v1859_v15 = vsel %vm1846_vm3, %v3460_v21, %v1858_v19  ;;  %v1825_v38 = vunpack.c.l.b16 %v1746_v35  ;;  %v1853_v23 = vsel %vm1852_vm6, %v1817_v12, %v1851_v33 }
 0x1d0   : > { %v1602_v32 = vadd.f32 %v1601_v2, %v1600_v51  ;;  %v1592_v26 = vrot.slane %v1591_v50, 4  ;;  %v1579_v58 = vadd.f32 %v1578_v14, %v1577_v48  ;;  %v1748_v28 = vpack.c.bf16 %v1588_v39, %v1588_v39 }
 0x1d1   : > { %v1860_v7 = vsel %vm1848_vm4, %v3450_v53, %v1859_v15  ;;  %v1855_v11 = vsel %vm1854_vm7, %v1818_v10, %v1853_v23  ;;  %v1838_v21 = vunpack.c.l.b16 %v1759_v42  ;;  %v1819_v8 = vunpack.c.l.b16 %v1740_v16 }
 0x1d2   : > { %v1603_v36 = vrot.slane %v1602_v32, 2  ;;  %v1593_v47 = vadd.f32 %v1592_v26, %v1591_v50  ;;  %v1747_v20 = vpack.c.bf16 %v1579_v58, %v1579_v58  ;;  %v1861_v29 = vsel %vm1850_vm5, %v1824_v17, %v1860_v7 }
 0x1d3   : > { %v1827_v53 = vunpack.c.l.b16 %v1748_v28  ;;  %v1862_v46 = vsel %vm1852_vm6, %v1825_v38, %v1861_v29  ;;  %v1714_v12 = vadd.f32 %v1713_v25, %v3353_v24  ;;  %v1761_v10 = vpack.c.bf16 %v3454_v54, %v3454_v54 }
 0x1d4   : > { %v1604_v52 = vadd.f32 %v1603_v36, %v1602_v32  ;;  %v1594_v43 = vrot.slane %v1593_v47, 2  ;;  %v1826_v62 = vunpack.c.l.b16 %v1747_v20  ;;  %v1723_v37 = vadd.f32 %v1722_v63, %v1721_v55 }
 0x1d5   : > { %v1857_v42 = vsel %vm1856_vm8, %v1819_v8, %v1855_v11  ;;  %v1731_v16 = vrot.slane %v3480_v45, 1  ;;  %v1752_v24 = vpack.c.bf16 %v2879_v3, %v2879_v3  ;;  %v1751_v25 = vpack.c.bf16 %v3016_v44, %v3016_v44 }
 0x1d6   : > { %v1605_v56 = vrot.slane %v1604_v52, 1  ;;  %v1595_v41 = vadd.f32 %v1594_v43, %v1593_v47  ;;  %v1863_v5 = vsel %vm1854_vm7, %v1826_v62, %v1862_v46  ;;  %v3622_v0 = vrot.slane %v2998_v13, 1 }
 0x1d7   : > { %v1864_v27 = vsel %vm1856_vm8, %v1827_v53, %v1863_v5  ;;  %v3623_v22 = vrot.slane %v3024_v60, 1  ;;  %v3624_v48 = vrot.slane %v3099_v57, 1  ;;  %v1872_v35 = vsel %vm1844_vm2, %v3310_v4, %v3321_v49  ;;  %v2115_v53 = vld [vmem:[%s3615_s4] ss:$0 sm:$0xff] }
 0x1d8   : > { %v1606_v59 = vadd.f32 %v1605_v56, %v1604_v52  ;;  %v1596_v31 = vrot.slane %v1595_v41, 1  ;;  %v1879_v40 = vpack.c.b16 %v1864_v27, %v1857_v42  ;;  %v1642_v54 = vadd.f32 %v3622_v0, %v2998_v13 }
 0x1d9   : > { %v1633_v30 = vadd.f32 %v3623_v22, %v3024_v60  ;;  %v1660_v51 = vadd.f32 %v3624_v48, %v3099_v57  ;;  %v3625_v44 = vrot.slane %v3107_v18, 1  ;;  %v1873_v34 = vsel %vm1846_vm3, %v1838_v21, %v1872_v35 }
 0x1da   : > { %v1750_v3 = vpack.c.bf16 %v1606_v59, %v1606_v59  ;;  %v1597_v55 = vadd.f32 %v1596_v31, %v1595_v41  ;;  %2247 = vmatprep.mubr.msk.bf16.mxu1 %vm1444_vm1, %v1879_v40  ;;  %v1840_v61 = vunpack.c.l.b16 %v1761_v10  ;;  %v1763_v60 = vpack.c.bf16 %v1723_v37, %v1723_v37 }
 0x1db   : > { %v1651_v13 = vadd.f32 %v3625_v44, %v3107_v18  ;;  %v3626_v1 = vpack.c.bf16 %v3314_v9, %v3314_v9  ;;  %v1762_v14 = vpack.c.bf16 %v1714_v12, %v1714_v12  ;;  %v1732_v2 = vadd.f32 %v1731_v16, %v3480_v45 }
 0x1dc   : > { %v1749_v4 = vpack.c.bf16 %v1597_v55, %v1597_v55  ;;  %v1831_v49 = vunpack.c.l.b16 %v1752_v24  ;;  %v1753_v50 = vpack.c.bf16 %v1633_v30, %v1633_v30  ;;  %v1754_v6 = vpack.c.bf16 %v1642_v54, %v1642_v54 }
 0x1dd   : > { %v1839_v57 = vunpack.c.l.b16 %v3626_v1  ;;  %v1829_v17 = vunpack.c.l.b16 %v1750_v3  ;;  %v1830_v18 = vunpack.c.l.b16 %v1751_v25  ;;  %v1755_v32 = vpack.c.bf16 %v1651_v13, %v1651_v13 }
 0x1de   : > { %v1828_v39 = vunpack.c.l.b16 %v1749_v4  ;;  %v1842_v26 = vunpack.c.l.b16 %v1763_v60  ;;  %v1756_v19 = vpack.c.bf16 %v1660_v51, %v1660_v51  ;;  %v1841_v63 = vunpack.c.l.b16 %v1762_v14 }
 0x1df   : > { %v1874_v33 = vsel %vm1848_vm4, %v1839_v57, %v1873_v34  ;;  %v1764_v9 = vpack.c.bf16 %v1732_v2, %v1732_v2  ;;  %v1832_v15 = vunpack.c.l.b16 %v1753_v50  ;;  %v1833_v36 = vunpack.c.l.b16 %v1754_v6 }
 0x1e0   : > { %v1875_v58 = vsel %vm1850_vm5, %v1840_v61, %v1874_v33  ;;  %v1865_v28 = vsel %vm1844_vm2, %v1829_v17, %v1828_v39  ;;  %v1834_v7 = vunpack.c.l.b16 %v1755_v32  ;;  %v1835_v29 = vunpack.c.l.b16 %v1756_v19 }
 0x1e1   : > { %v1866_v45 = vsel %vm1846_vm3, %v1830_v18, %v1865_v28  ;;  %v1876_v20 = vsel %vm1852_vm6, %v1841_v63, %v1875_v58  ;;  %v1843_v52 = vunpack.c.l.b16 %v1764_v9 }
 0x1e2   : > { %v1867_v47 = vsel %vm1848_vm4, %v1831_v49, %v1866_v45  ;;  %v1877_v23 = vsel %vm1854_vm7, %v1842_v26, %v1876_v20 }
 0x1e3   : > { %v1868_v38 = vsel %vm1850_vm5, %v1832_v15, %v1867_v47  ;;  %v1878_v21 = vsel %vm1856_vm8, %v1843_v52, %v1877_v23 }
 0x1e4   : > { %v1869_v43 = vsel %vm1852_vm6, %v1833_v36, %v1868_v38 }
 0x1e5   : > { %v1870_v62 = vsel %vm1854_vm7, %v1834_v7, %v1869_v43 }
 0x1e6   : > { %v1871_v11 = vsel %vm1856_vm8, %v1835_v29, %v1870_v62 }
 0x1e7   : > { %v1880_v8 = vpack.c.b16 %v1878_v21, %v1871_v11 }
 0x1e9   : > { %2248 = vmatmul.mubr.msk.bf16.vlgmr.msra.gmra.mxu1 %vm1444_vm1, %v1880_v8 }
 0x2a9   : > { %v2249_v46 = vpop.f32.mrf.mxu1 }
 0x2aa   : > { %v1954_v12 = vadd.f32 %v2249_v46, %v2115_v53 }
 0x2ab   : > { %v1945_v56 = vpop.f32.mrf.mxu1 }
 0x2ac   : > { %1962 = vst [vmem:[%s218_s16 + $0x10] sm:$0xff] %v1954_v12  ;;  %v1946_v41 = vadd.f32 %v2115_v53, %v1945_v56 }
 0x2ad   : > { %v2250_v5 = vpop.f32.mrf.mxu1 }
 0x2ae   : > { %1960 = vst [vmem:[%s218_s16] sm:$0xff] %v1946_v41  ;;  %v1957_v10 = vadd.f32 %v2250_v5, %v2115_v53 }
 0x2af   : > { %v1948_v37 = vpop.f32.mrf.mxu1 }
 0x2b0   : > { %1963 = vst [vmem:[%s218_s16 + $0x18] sm:$0xff] %v1957_v10  ;;  %v1949_v42 = vadd.f32 %v2115_v53, %v1948_v37 }
 0x2b2   : > { %1961 = vst [vmem:[%s218_s16 + $0x8] sm:$0xff] %v1949_v42 }
 0x2b3   : > { %2479 = shalt.err (!%p2476_p3)
}
 0x2b4   : > { %s2480_s10 = scalar_lea.hbm %s3569_s30, 512  ;;  %s2484_s13 = scalar_lea.hbm %s3616_s5, 1024 }
 0x2b5   : > { %p2481_p4 = scmp.ne.s32.totalorder %s3569_s30, %s2480_s10  ;;  %p2485_p9 = scmp.lt.s32.totalorder %s3569_s30, %s3616_s5 }
 0x2b6   : > { %p2486_p10 = scmp.lt.s32.totalorder %s2484_s13, %s2480_s10 }
 0x2b7   : > { %p2482_p7 = pnand %p2481_p4, %p2599_p5 }
 0x2b8   : > { %p2487_p11 = por %p2486_p10, %p2485_p9 }
 0x2b9   : > { %p2483_p8 = pneg %p2482_p7 }
 0x2bb   : > { %p2488_p12 = pnand %p2487_p11, %p2483_p8 }
 0x2bd   : > { %2491 = shalt.err (!%p2488_p12)
}
 0x2be   : > { %s2529_s16 = smov 128   ;;  %s2530_s23 = smov 8  }
 0x2bf   : > { %2257 = dma.vmem_to_hbm [thread:$0]  (%p2599_p5), %s3564_s17, 512, %s3569_s30, %s3571_s6, %s2529_s16, %s2529_s16, %s2530_s23  }
 0x2c0 PF: > { %p2263_p13 = scmp.ge.s32.totalorder %s2526_s21, 2  ;;  %s1993_s25 = sand.u32 1, %s2514_s18  }
 0x2c1   : > { %s1994_s26 = scalar_lea.sflag [#allocation3], %s1993_s25 }
 0x2c2   : > { %p2260_p0 = pnand %p2263_p13, %p2603_p6 }
 0x2c4   : > { %p2261_p1 = pneg %p2260_p0 }
 0x2c6   : > { %2509 = dma.done.wait (%p2261_p1), %s1994_s26, 512  }
 0x2c7   : > { %2511 = vsyncadd (%p2261_p1), %s1994_s26, 4294966784  ;;  %p15_p2 = scmp.ge.s32.totalorder %s2586_s24, 4   ;;  %s3627_s18 = smov %s2518_s19 }
 0x2c8   : > { %s3628_s19 = smov %s2522_s20  ;;  %s3629_s20 = smov %s2597_s27 }
 0x2c9   : > { %s3630_s21 = smov %s2586_s24  ;;  %17 = sbr.rel (!%p15_p2) target bundleno = 3 (0x3), region = 75 }
 0x2ce   :  { %1999 = vsyncpa [#allocation3], 1 }
 0x2cf   :  { %2001 = vsyncpa [#allocation3 + $0x1], 1 }

</bundles_post_ra>
